<compile_context>
chip_gen: v7x
topology: tpu7x:2x2x1
jax: 0.10.0
libtpu: 0.0.40
codegen_flags: <defaults>
</compile_context>

<pallas_src>
import functools

import jax
import jax.numpy as jnp
import numpy as np
from jax.experimental import pallas as pl
from jax.experimental.pallas import tpu as pltpu

BN_EPS = 1e-5


# --------------------------------------------------------------------------
# Wrapper-side weight packing (all structural indices are static numpy; the
# gathers/scatters below trace cleanly under jit).
# --------------------------------------------------------------------------
def _pack_conv3x3(w, W):
    """(C_out, C_in, 3, 3) conv weight -> (3, W*C_in, W*C_out) bf16 banded mats.

    Input slab lane layout is w_in*C_in + ci, output layout w_out*C_out + co.
    For each dy the matrix is block-tridiagonal over w: the dx taps and the
    left/right zero padding of the 3x3 conv live in the band structure.
    """
    C_out, C_in = int(w.shape[0]), int(w.shape[1])
    wo, dx, ci, co = np.meshgrid(np.arange(W), np.arange(3),
                                 np.arange(C_in), np.arange(C_out), indexing="ij")
    wi = wo + dx - 1
    keep = (wi >= 0) & (wi < W)
    wo, dx, ci, co, wi = (a[keep] for a in (wo, dx, ci, co, wi))
    rows = wi * C_in + ci
    cols = wo * C_out + co
    mats = []
    for dy in range(3):
        vals = w[co, ci, dy, dx]
        mats.append(jnp.zeros((W * C_in, W * C_out), jnp.float32)
                    .at[rows, cols].set(vals))
    return jnp.stack(mats).astype(jnp.bfloat16)


def _pack_deconv2x2(w, Wc):
    """ConvTranspose2d(k=2,s=2) weight (C_in, C_up, 2, 2) -> (2, Wc*C_in, 2*Wc*C_up).

    M[dy] maps one lane-packed coarse row (lane = w*C_in + ci) to the fine output
    row of parity dy (lane = (2w+dx)*C_up + co).
    """
    C_in, C_up = int(w.shape[0]), int(w.shape[1])
    wi, ci, dx, co = np.meshgrid(np.arange(Wc), np.arange(C_in),
                                 np.arange(2), np.arange(C_up), indexing="ij")
    rows = (wi * C_in + ci).ravel()
    cols = ((2 * wi + dx) * C_up + co).ravel()
    mats = []
    for dy in range(2):
        vals = w[ci.ravel(), co.ravel(), dy, dx.ravel()]
        mats.append(jnp.zeros((Wc * C_in, 2 * Wc * C_up), jnp.float32)
                    .at[rows, cols].set(vals))
    return jnp.stack(mats).astype(jnp.bfloat16)


def _pack_conv1x1(w2d, W):
    """1x1 conv weight (C_out, C_in) -> block-diagonal (W*C_in, W*C_out) bf16."""
    C_out, C_in = int(w2d.shape[0]), int(w2d.shape[1])
    wi, ci, co = np.meshgrid(np.arange(W), np.arange(C_in), np.arange(C_out),
                             indexing="ij")
    rows = (wi * C_in + ci).ravel()
    cols = (wi * C_out + co).ravel()
    vals = w2d[co.ravel(), ci.ravel()]
    return (jnp.zeros((W * C_in, W * C_out), jnp.float32)
            .at[rows, cols].set(vals).astype(jnp.bfloat16))


def _row_interleave_mats(H):
    """(2, H, H//2) 0/1 matrices: P[dy] @ y puts coarse row h at fine row 2h+dy."""
    p = np.zeros((2, H, H // 2), np.float32)
    for h in range(H // 2):
        p[0, 2 * h, h] = 1.0
        p[1, 2 * h + 1, h] = 1.0
    return jnp.asarray(p, dtype=jnp.bfloat16)


def _fold_bn(conv):
    """Fold eval-mode BatchNorm into the conv weight; return (scaled_w, shift)."""
    s = conv["gamma"] / jnp.sqrt(conv["var"] + BN_EPS)
    w = conv["w"] * s[:, None, None, None]
    shift = (conv["b"] - conv["mean"]) * s + conv["beta"]
    return w, shift


def _lane_tile(v, W):
    """Per-channel vector (C,) -> lane-tiled (1, W*C) f32 (lane = w*C + c)."""
    return jnp.tile(v, W).reshape(1, W * v.shape[0]).astype(jnp.float32)


# --------------------------------------------------------------------------
# In-kernel helper.
# --------------------------------------------------------------------------
def _conv3x3_bn_relu(parts, shift, H):
    """3x3 conv (pad=1) + folded-BN shift + ReLU in the lane-packed (H, W*C) layout.

    `parts` is a list of (bf16 slab, (3, L_in, L_out) banded-weight ref) pairs
    whose contributions are summed (conv1 keeps the skip slab and the upsampled
    slab separate so no lane concat is ever needed).  dx taps / width padding are
    encoded in the banded weights; the dy shift is applied to the f32 partial
    sums with a zero-row concatenate.
    """
    t = [None, None, None]
    for x, w_ref in parts:
        for dy in range(3):
            u = jnp.dot(x, w_ref[dy], preferred_element_type=jnp.float32)
            t[dy] = u if t[dy] is None else t[dy] + u
    zrow = jnp.zeros((1, t[1].shape[-1]), jnp.float32)
    acc = (t[1] + shift
           + jnp.concatenate([zrow, t[0][:H - 1, :]], axis=0)   # dy=0 tap (row h-1)
           + jnp.concatenate([t[2][1:, :], zrow], axis=0))      # dy=2 tap (row h+1)
    return jnp.maximum(acc, 0.0)


# --------------------------------------------------------------------------
# Fused decoder forward: one pallas_call, grid over batch.
# --------------------------------------------------------------------------
def unet_decoder_forward(params, inputs_nchw, encoder_outputs_nchw, levels=2):
    N, Cin0, Hc0, Wc0 = inputs_nchw.shape
    enc = list(encoder_outputs_nchw)[::-1]        # forward() reverses encoder_outputs

    # bottleneck -> lane-packed (N, Hc0, Wc0*Cin0) bf16
    x0 = jnp.transpose(inputs_nchw, (0, 2, 3, 1)).reshape(N, Hc0, Wc0 * Cin0)
    x0 = x0.astype(jnp.bfloat16)

    def _bcast_spec(arr):
        zeros = (0,) * arr.ndim
        return pl.BlockSpec(arr.shape, lambda n, _z=zeros: _z)

    kernel_inputs = [x0]
    in_specs = [pl.BlockSpec((None, Hc0, Wc0 * Cin0), lambda n: (n, 0, 0))]
    cfg = []

    for i in range(levels):
        skip = enc[i]
        _, Cskip, H, W = skip.shape
        Hc, Wc = H // 2, W // 2
        up_p = params[f"upconv{i + 1}"]
        cb = params[f"convblock{i + 1}"]
        Cup = int(up_p["w"].shape[1])
        Cmid = int(cb["conv1"]["w"].shape[0])
        Cout = int(cb["conv2"]["w"].shape[0])

        mup = _pack_deconv2x2(up_p["w"], Wc)                    # (2, Wc*Cin, W*Cup)
        bup = _lane_tile(up_p["b"], W)                          # (1, W*Cup)
        pmat = _row_interleave_mats(H)                          # (2, H, Hc)

        w1f, shift1 = _fold_bn(cb["conv1"])
        w1s = _pack_conv3x3(w1f[:, :Cskip], W)                  # skip-slab part
        w1u = _pack_conv3x3(w1f[:, Cskip:], W)                  # upsampled-slab part
        sh1 = _lane_tile(shift1, W)
        w2f, shift2 = _fold_bn(cb["conv2"])
        w2 = _pack_conv3x3(w2f, W)
        sh2 = _lane_tile(shift2, W)

        # encoder skip, un-padded, lane-packed, bf16: (N, H, W*Cskip)
        sk = jnp.transpose(skip, (0, 2, 3, 1)).reshape(N, H, W * Cskip)
        sk = sk.astype(jnp.bfloat16)

        per_level = [sk, mup, pmat, bup, w1s, w1u, sh1, w2, sh2]
        kernel_inputs += per_level
        in_specs.append(pl.BlockSpec((None, H, W * Cskip), lambda n: (n, 0, 0)))
        in_specs += [_bcast_spec(a) for a in per_level[1:]]
        cfg.append(dict(H=H, W=W, Cout=Cout))

    out_p = params["output"]
    out_ch = int(out_p["w"].shape[0])
    Wl, Hl, Cl = cfg[-1]["W"], cfg[-1]["H"], cfg[-1]["Cout"]
    wout = _pack_conv1x1(out_p["w"].reshape(out_ch, -1), Wl)
    bout = _lane_tile(out_p["b"], Wl)
    kernel_inputs += [wout, bout]
    in_specs += [_bcast_spec(wout), _bcast_spec(bout)]
    n_in = len(kernel_inputs)

    out_shape = tuple(
        [jax.ShapeDtypeStruct((N, c["H"], c["W"] * c["Cout"]), jnp.float32)
         for c in cfg]
        + [jax.ShapeDtypeStruct((N, Hl, Wl * out_ch), jnp.float32)])
    out_specs = tuple(
        [pl.BlockSpec((None, c["H"], c["W"] * c["Cout"]), lambda n: (n, 0, 0))
         for c in cfg]
        + [pl.BlockSpec((None, Hl, Wl * out_ch), lambda n: (n, 0, 0))])

    # ---- the single fused kernel (one image per grid step) ------------------
    def kernel(*refs):
        in_refs, out_refs = refs[:n_in], refs[n_in:]
        wout_ref, bout_ref = in_refs[n_in - 2], in_refs[n_in - 1]
        a = in_refs[0][...]                               # (Hc0, Wc0*Cin0) bf16
        for i in range(levels):
            (skip_ref, mup_ref, p_ref, bup_ref,
             w1s_ref, w1u_ref, sh1_ref, w2_ref, sh2_ref) = \
                in_refs[1 + 9 * i: 1 + 9 * (i + 1)]
            H = cfg[i]["H"]

            # ConvTranspose2d(k=2, s=2): one matmul per output-row parity, then a
            # tiny 0/1 row-interleave matmul (exact selection, so the bf16 cast of
            # y0/y1 is the only rounding point).
            y0 = jnp.dot(a, mup_ref[0],
                         preferred_element_type=jnp.float32) + bup_ref[...]
            y1 = jnp.dot(a, mup_ref[1],
                         preferred_element_type=jnp.float32) + bup_ref[...]
            up = (jnp.dot(p_ref[0], y0.astype(jnp.bfloat16),
                          preferred_element_type=jnp.float32)
                  + jnp.dot(p_ref[1], y1.astype(jnp.bfloat16),
                            preferred_element_type=jnp.float32))
            up = up.astype(jnp.bfloat16)                  # (H, W*Cup)

            # concat([skip, up]) is folded into conv1's split banded weights.
            h1 = _conv3x3_bn_relu([(skip_ref[...], w1s_ref), (up, w1u_ref)],
                                  sh1_ref[...], H)
            h2 = _conv3x3_bn_relu([(h1.astype(jnp.bfloat16), w2_ref)],
                                  sh2_ref[...], H)
            out_refs[i][...] = h2                         # decoder output i (f32)
            a = h2.astype(jnp.bfloat16)                   # carry (H, W*Cout)

        # final 1x1 conv (block-diagonal lane matmul)
        y = jnp.dot(a, wout_ref[...],
                    preferred_element_type=jnp.float32) + bout_ref[...]
        out_refs[levels][...] = y

    results = pl.pallas_call(
        kernel,
        grid=(N,),
        in_specs=in_specs,
        out_specs=out_specs,
        out_shape=out_shape,
        compiler_params=pltpu.CompilerParams(
            dimension_semantics=("parallel",)),
    )(*kernel_inputs)

    decoder_outputs = []
    for i in range(levels):
        c = cfg[i]
        d = results[i].reshape(N, c["H"], c["W"], c["Cout"])
        decoder_outputs.append(jnp.transpose(d, (0, 3, 1, 2)))
    out = results[levels].reshape(N, Hl, Wl, out_ch)
    return decoder_outputs, jnp.transpose(out, (0, 3, 1, 2))


# --------------------------------------------------------------------------
# Pure-JAX f32 reference (eval-mode BN), used only for correctness checking.
# --------------------------------------------------------------------------
def _ref_forward(params, inputs_nchw, encoder_outputs_nchw, levels=2):
    hi = jax.lax.Precision.HIGHEST
    enc = list(encoder_outputs_nchw)[::-1]
    x = jnp.transpose(inputs_nchw, (0, 2, 3, 1))
    dec = []
    for i in range(levels):
        up_p = params[f"upconv{i + 1}"]
        n, h, w, cin = x.shape
        cup = up_p["w"].shape[1]
        wm = jnp.transpose(up_p["w"], (0, 2, 3, 1)).reshape(cin, 4 * cup)
        y = jnp.dot(x.reshape(-1, cin), wm, precision=hi) + jnp.tile(up_p["b"], 4)
        y = y.reshape(n, h, w, 2, 2, cup).transpose(0, 1, 3, 2, 4, 5)
        y = y.reshape(n, 2 * h, 2 * w, cup)
        x = jnp.concatenate([jnp.transpose(enc[i], (0, 2, 3, 1)), y], axis=-1)
        cb = params[f"convblock{i + 1}"]
        for j in (1, 2):
            c = cb[f"conv{j}"]
            ci, co = c["w"].shape[1], c["w"].shape[0]
            hh, ww = x.shape[1], x.shape[2]
            xp = jnp.pad(x, ((0, 0), (1, 1), (1, 1), (0, 0)))
            cols = jnp.concatenate(
                [xp[:, dy:dy + hh, dx:dx + ww, :]
                 for dy in range(3) for dx in range(3)], axis=-1).reshape(-1, 9 * ci)
            wm2 = jnp.transpose(c["w"], (2, 3, 1, 0)).reshape(9 * ci, co)
            s = c["gamma"] / jnp.sqrt(c["var"] + BN_EPS)
            z = (jnp.dot(cols, wm2, precision=hi) * s
                 + ((c["b"] - c["mean"]) * s + c["beta"]))
            x = jnp.maximum(z, 0.0).reshape(n, hh, ww, co)
        dec.append(jnp.transpose(x, (0, 3, 1, 2)))
    op = params["output"]
    oc = op["w"].shape[0]
    out = jnp.dot(x.reshape(-1, x.shape[-1]), op["w"].reshape(oc, -1).T,
                  precision=hi) + op["b"]
    out = out.reshape(x.shape[0], x.shape[1], x.shape[2], oc)
    return dec, jnp.transpose(out, (0, 3, 1, 2))


# --------------------------------------------------------------------------
# Parameters (same layout as the PyTorch module).
# --------------------------------------------------------------------------
def init_params(key, feature_maps=4, levels=2, out_channels=2):
    def nrm(k, shape, s=0.1):
        return (s * jax.random.normal(k, shape)).astype(jnp.float32)

    params = {}
    keys = iter(jax.random.split(key, 64))
    for i in range(levels):
        cin = 2 ** (levels - i) * feature_maps
        cout = 2 ** (levels - i - 1) * feature_maps
        params[f"upconv{i + 1}"] = {
            "w": nrm(next(keys), (cin, cout, 2, 2)),
            "b": nrm(next(keys), (cout,)),
        }
        block = {}
        for j, (ci, co) in enumerate([(cin, cout), (cout, cout)], start=1):
            block[f"conv{j}"] = {
                "w": nrm(next(keys), (co, ci, 3, 3)),
                "b": nrm(next(keys), (co,)),
                "gamma": 1.0 + nrm(next(keys), (co,)),
                "beta": nrm(next(keys), (co,)),
                "mean": nrm(next(keys), (co,)),
                "var": 1.0 + 0.1 * jax.random.uniform(next(keys), (co,)),
            }
        params[f"convblock{i + 1}"] = block
    params["output"] = {
        "w": nrm(next(keys), (out_channels, feature_maps, 1, 1)),
        "b": nrm(next(keys), (out_channels,)),
    }
    return params


# ---------------------------------- main ------------------------------------
if __name__ == "__main__":
    feature_maps, levels, out_channels = 4, 2, 2
    batch, bottleneck_hw = 2, 4

    key = jax.random.PRNGKey(0)
    k_par, k_in, k_e0, k_e1 = jax.random.split(key, 4)
    params = init_params(k_par, feature_maps, levels, out_channels)

    inputs = jax.random.normal(
        k_in, (batch, 2 ** levels * feature_maps, bottleneck_hw, bottleneck_hw),
        jnp.float32)
    encoder_outputs = [
        jax.random.normal(k_e0, (batch, feature_maps, 16, 16), jnp.float32),
        jax.random.normal(k_e1, (batch, 2 * feature_maps, 8, 8), jnp.float32),
    ]

    fwd = jax.jit(functools.partial(unet_decoder_forward, levels=levels))
    decoder_outputs, outputs = fwd(params, inputs, encoder_outputs)
    jax.block_until_ready(outputs)
    jax.block_until_ready(decoder_outputs)

    assert outputs.shape == (batch, out_channels, 16, 16), outputs.shape
    assert decoder_outputs[0].shape == (batch, 2 * feature_maps, 8, 8)
    assert decoder_outputs[1].shape == (batch, feature_maps, 16, 16)

    # numerical check vs. pure-JAX f32 reference (kernel uses bf16 matmul
    # operands with f32 accumulation -> loose tolerance)
    ref_dec, ref_out = jax.jit(functools.partial(_ref_forward, levels=levels))(
        params, inputs, encoder_outputs)
    np.testing.assert_allclose(np.asarray(outputs), np.asarray(ref_out),
                               rtol=5e-2, atol=5e-2)
    for a, b in zip(decoder_outputs, ref_dec):
        np.testing.assert_allclose(np.asarray(a), np.asarray(b),
                                   rtol=5e-2, atol=5e-2)
    print("KERNEL_OK")
</pallas_src>

<mosaic_0001>
module attributes {stable_mosaic.version = 11 : i64} {
  func.func @kernel(%arg0: i32, %arg1: memref<1x4x64xbf16, #tpu.memory_space<vmem>>, %arg2: memref<1x8x64xbf16, #tpu.memory_space<vmem>>, %arg3: memref<2x64x64xbf16, #tpu.memory_space<vmem>>, %arg4: memref<2x8x4xbf16, #tpu.memory_space<vmem>>, %arg5: memref<1x64xf32, #tpu.memory_space<vmem>>, %arg6: memref<3x64x64xbf16, #tpu.memory_space<vmem>>, %arg7: memref<3x64x64xbf16, #tpu.memory_space<vmem>>, %arg8: memref<1x64xf32, #tpu.memory_space<vmem>>, %arg9: memref<3x64x64xbf16, #tpu.memory_space<vmem>>, %arg10: memref<1x64xf32, #tpu.memory_space<vmem>>, %arg11: memref<1x16x64xbf16, #tpu.memory_space<vmem>>, %arg12: memref<2x64x64xbf16, #tpu.memory_space<vmem>>, %arg13: memref<2x16x8xbf16, #tpu.memory_space<vmem>>, %arg14: memref<1x64xf32, #tpu.memory_space<vmem>>, %arg15: memref<3x64x64xbf16, #tpu.memory_space<vmem>>, %arg16: memref<3x64x64xbf16, #tpu.memory_space<vmem>>, %arg17: memref<1x64xf32, #tpu.memory_space<vmem>>, %arg18: memref<3x64x64xbf16, #tpu.memory_space<vmem>>, %arg19: memref<1x64xf32, #tpu.memory_space<vmem>>, %arg20: memref<64x32xbf16, #tpu.memory_space<vmem>>, %arg21: memref<1x32xf32, #tpu.memory_space<vmem>>, %arg22: memref<1x8x64xf32, #tpu.memory_space<vmem>>, %arg23: memref<1x16x64xf32, #tpu.memory_space<vmem>>, %arg24: memref<1x16x32xf32, #tpu.memory_space<vmem>>) attributes {dimension_semantics = [#tpu.dimension_semantics<parallel>], iteration_bounds = array<i64: 2>, scalar_prefetch = 0 : i64, scratch_operands = 0 : i64, tpu.core_type = #tpu.core_type<tc>, window_params = [{transform_indices = @transform_0, window_bounds = array<i64: 1, 4, 64>}, {transform_indices = @transform_1, window_bounds = array<i64: 1, 8, 64>}, {pipeline_mode = #tpu.pipeline_mode<synchronous>, transform_indices = @transform_2, window_bounds = array<i64: 2, 64, 64>}, {pipeline_mode = #tpu.pipeline_mode<synchronous>, transform_indices = @transform_3, window_bounds = array<i64: 2, 8, 4>}, {pipeline_mode = #tpu.pipeline_mode<synchronous>, transform_indices = @transform_4, window_bounds = array<i64: 1, 64>}, {pipeline_mode = #tpu.pipeline_mode<synchronous>, transform_indices = @transform_5, window_bounds = array<i64: 3, 64, 64>}, {pipeline_mode = #tpu.pipeline_mode<synchronous>, transform_indices = @transform_6, window_bounds = array<i64: 3, 64, 64>}, {pipeline_mode = #tpu.pipeline_mode<synchronous>, transform_indices = @transform_7, window_bounds = array<i64: 1, 64>}, {pipeline_mode = #tpu.pipeline_mode<synchronous>, transform_indices = @transform_8, window_bounds = array<i64: 3, 64, 64>}, {pipeline_mode = #tpu.pipeline_mode<synchronous>, transform_indices = @transform_9, window_bounds = array<i64: 1, 64>}, {transform_indices = @transform_10, window_bounds = array<i64: 1, 16, 64>}, {pipeline_mode = #tpu.pipeline_mode<synchronous>, transform_indices = @transform_11, window_bounds = array<i64: 2, 64, 64>}, {pipeline_mode = #tpu.pipeline_mode<synchronous>, transform_indices = @transform_12, window_bounds = array<i64: 2, 16, 8>}, {pipeline_mode = #tpu.pipeline_mode<synchronous>, transform_indices = @transform_13, window_bounds = array<i64: 1, 64>}, {pipeline_mode = #tpu.pipeline_mode<synchronous>, transform_indices = @transform_14, window_bounds = array<i64: 3, 64, 64>}, {pipeline_mode = #tpu.pipeline_mode<synchronous>, transform_indices = @transform_15, window_bounds = array<i64: 3, 64, 64>}, {pipeline_mode = #tpu.pipeline_mode<synchronous>, transform_indices = @transform_16, window_bounds = array<i64: 1, 64>}, {pipeline_mode = #tpu.pipeline_mode<synchronous>, transform_indices = @transform_17, window_bounds = array<i64: 3, 64, 64>}, {pipeline_mode = #tpu.pipeline_mode<synchronous>, transform_indices = @transform_18, window_bounds = array<i64: 1, 64>}, {pipeline_mode = #tpu.pipeline_mode<synchronous>, transform_indices = @transform_19, window_bounds = array<i64: 64, 32>}, {pipeline_mode = #tpu.pipeline_mode<synchronous>, transform_indices = @transform_20, window_bounds = array<i64: 1, 32>}, {transform_indices = @transform_21, window_bounds = array<i64: 1, 8, 64>}, {transform_indices = @transform_22, window_bounds = array<i64: 1, 16, 64>}, {transform_indices = @transform_23, window_bounds = array<i64: 1, 16, 32>}]} {
    %c0 = arith.constant 0 : index
    %c0_0 = arith.constant 0 : index
    %c0_1 = arith.constant 0 : index
    %0 = vector.load %arg1[%c0, %c0_0, %c0_1] : memref<1x4x64xbf16, #tpu.memory_space<vmem>>, vector<1x4x64xbf16>
    %1 = vector.shape_cast %0 : vector<1x4x64xbf16> to vector<4x64xbf16>
    %c0_2 = arith.constant 0 : index
    %c0_3 = arith.constant 0 : index
    %c0_4 = arith.constant 0 : index
    %2 = vector.load %arg3[%c0_2, %c0_3, %c0_4] : memref<2x64x64xbf16, #tpu.memory_space<vmem>>, vector<1x64x64xbf16>
    %3 = vector.shape_cast %2 : vector<1x64x64xbf16> to vector<64x64xbf16>
    %cst = arith.constant dense<0.000000e+00> : vector<4x64xf32>
    %4 = tpu.matmul %1, %3, %cst {dimension_numbers = #tpu.dot_dimension_numbers<[1], [0], [0], [1], [0, 0, 1, 1], [], []>} : vector<4x64xbf16>, vector<64x64xbf16>, vector<4x64xf32> -> vector<4x64xf32>
    %c0_5 = arith.constant 0 : index
    %c0_6 = arith.constant 0 : index
    %5 = vector.load %arg5[%c0_5, %c0_6] : memref<1x64xf32, #tpu.memory_space<vmem>>, vector<1x64xf32>
    %6 = vector.broadcast %5 : vector<1x64xf32> to vector<4x64xf32>
    %7 = arith.addf %4, %6 : vector<4x64xf32>
    %c1 = arith.constant 1 : index
    %c0_7 = arith.constant 0 : index
    %c0_8 = arith.constant 0 : index
    %8 = vector.load %arg3[%c1, %c0_7, %c0_8] : memref<2x64x64xbf16, #tpu.memory_space<vmem>>, vector<1x64x64xbf16>
    %9 = vector.shape_cast %8 : vector<1x64x64xbf16> to vector<64x64xbf16>
    %cst_9 = arith.constant dense<0.000000e+00> : vector<4x64xf32>
    %10 = tpu.matmul %1, %9, %cst_9 {dimension_numbers = #tpu.dot_dimension_numbers<[1], [0], [0], [1], [0, 0, 1, 1], [], []>} : vector<4x64xbf16>, vector<64x64xbf16>, vector<4x64xf32> -> vector<4x64xf32>
    %c0_10 = arith.constant 0 : index
    %c0_11 = arith.constant 0 : index
    %11 = vector.load %arg5[%c0_10, %c0_11] : memref<1x64xf32, #tpu.memory_space<vmem>>, vector<1x64xf32>
    %12 = vector.broadcast %11 : vector<1x64xf32> to vector<4x64xf32>
    %13 = arith.addf %10, %12 : vector<4x64xf32>
    %c0_12 = arith.constant 0 : index
    %c0_13 = arith.constant 0 : index
    %c0_14 = arith.constant 0 : index
    %14 = vector.load %arg4[%c0_12, %c0_13, %c0_14] : memref<2x8x4xbf16, #tpu.memory_space<vmem>>, vector<1x8x4xbf16>
    %15 = vector.shape_cast %14 : vector<1x8x4xbf16> to vector<8x4xbf16>
    %16 = arith.truncf %7 : vector<4x64xf32> to vector<4x64xbf16>
    %cst_15 = arith.constant dense<0.000000e+00> : vector<8x64xf32>
    %17 = tpu.matmul %15, %16, %cst_15 {dimension_numbers = #tpu.dot_dimension_numbers<[1], [0], [0], [1], [0, 0, 1, 1], [], []>} : vector<8x4xbf16>, vector<4x64xbf16>, vector<8x64xf32> -> vector<8x64xf32>
    %c1_16 = arith.constant 1 : index
    %c0_17 = arith.constant 0 : index
    %c0_18 = arith.constant 0 : index
    %18 = vector.load %arg4[%c1_16, %c0_17, %c0_18] : memref<2x8x4xbf16, #tpu.memory_space<vmem>>, vector<1x8x4xbf16>
    %19 = vector.shape_cast %18 : vector<1x8x4xbf16> to vector<8x4xbf16>
    %20 = arith.truncf %13 : vector<4x64xf32> to vector<4x64xbf16>
    %cst_19 = arith.constant dense<0.000000e+00> : vector<8x64xf32>
    %21 = tpu.matmul %19, %20, %cst_19 {dimension_numbers = #tpu.dot_dimension_numbers<[1], [0], [0], [1], [0, 0, 1, 1], [], []>} : vector<8x4xbf16>, vector<4x64xbf16>, vector<8x64xf32> -> vector<8x64xf32>
    %22 = arith.addf %17, %21 : vector<8x64xf32>
    %23 = arith.truncf %22 : vector<8x64xf32> to vector<8x64xbf16>
    %c0_20 = arith.constant 0 : index
    %c0_21 = arith.constant 0 : index
    %c0_22 = arith.constant 0 : index
    %24 = vector.load %arg2[%c0_20, %c0_21, %c0_22] : memref<1x8x64xbf16, #tpu.memory_space<vmem>>, vector<1x8x64xbf16>
    %25 = vector.shape_cast %24 : vector<1x8x64xbf16> to vector<8x64xbf16>
    %c0_23 = arith.constant 0 : index
    %c0_24 = arith.constant 0 : index
    %26 = vector.load %arg8[%c0_23, %c0_24] : memref<1x64xf32, #tpu.memory_space<vmem>>, vector<1x64xf32>
    %c0_25 = arith.constant 0 : index
    %c0_26 = arith.constant 0 : index
    %c0_27 = arith.constant 0 : index
    %27 = vector.load %arg6[%c0_25, %c0_26, %c0_27] : memref<3x64x64xbf16, #tpu.memory_space<vmem>>, vector<1x64x64xbf16>
    %28 = vector.shape_cast %27 : vector<1x64x64xbf16> to vector<64x64xbf16>
    %cst_28 = arith.constant dense<0.000000e+00> : vector<8x64xf32>
    %29 = tpu.matmul %25, %28, %cst_28 {dimension_numbers = #tpu.dot_dimension_numbers<[1], [0], [0], [1], [0, 0, 1, 1], [], []>} : vector<8x64xbf16>, vector<64x64xbf16>, vector<8x64xf32> -> vector<8x64xf32>
    %c1_29 = arith.constant 1 : index
    %c0_30 = arith.constant 0 : index
    %c0_31 = arith.constant 0 : index
    %30 = vector.load %arg6[%c1_29, %c0_30, %c0_31] : memref<3x64x64xbf16, #tpu.memory_space<vmem>>, vector<1x64x64xbf16>
    %31 = vector.shape_cast %30 : vector<1x64x64xbf16> to vector<64x64xbf16>
    %cst_32 = arith.constant dense<0.000000e+00> : vector<8x64xf32>
    %32 = tpu.matmul %25, %31, %cst_32 {dimension_numbers = #tpu.dot_dimension_numbers<[1], [0], [0], [1], [0, 0, 1, 1], [], []>} : vector<8x64xbf16>, vector<64x64xbf16>, vector<8x64xf32> -> vector<8x64xf32>
    %c2 = arith.constant 2 : index
    %c0_33 = arith.constant 0 : index
    %c0_34 = arith.constant 0 : index
    %33 = vector.load %arg6[%c2, %c0_33, %c0_34] : memref<3x64x64xbf16, #tpu.memory_space<vmem>>, vector<1x64x64xbf16>
    %34 = vector.shape_cast %33 : vector<1x64x64xbf16> to vector<64x64xbf16>
    %cst_35 = arith.constant dense<0.000000e+00> : vector<8x64xf32>
    %35 = tpu.matmul %25, %34, %cst_35 {dimension_numbers = #tpu.dot_dimension_numbers<[1], [0], [0], [1], [0, 0, 1, 1], [], []>} : vector<8x64xbf16>, vector<64x64xbf16>, vector<8x64xf32> -> vector<8x64xf32>
    %c0_36 = arith.constant 0 : index
    %c0_37 = arith.constant 0 : index
    %c0_38 = arith.constant 0 : index
    %36 = vector.load %arg7[%c0_36, %c0_37, %c0_38] : memref<3x64x64xbf16, #tpu.memory_space<vmem>>, vector<1x64x64xbf16>
    %37 = vector.shape_cast %36 : vector<1x64x64xbf16> to vector<64x64xbf16>
    %cst_39 = arith.constant dense<0.000000e+00> : vector<8x64xf32>
    %38 = tpu.matmul %23, %37, %cst_39 {dimension_numbers = #tpu.dot_dimension_numbers<[1], [0], [0], [1], [0, 0, 1, 1], [], []>} : vector<8x64xbf16>, vector<64x64xbf16>, vector<8x64xf32> -> vector<8x64xf32>
    %39 = arith.addf %29, %38 : vector<8x64xf32>
    %c1_40 = arith.constant 1 : index
    %c0_41 = arith.constant 0 : index
    %c0_42 = arith.constant 0 : index
    %40 = vector.load %arg7[%c1_40, %c0_41, %c0_42] : memref<3x64x64xbf16, #tpu.memory_space<vmem>>, vector<1x64x64xbf16>
    %41 = vector.shape_cast %40 : vector<1x64x64xbf16> to vector<64x64xbf16>
    %cst_43 = arith.constant dense<0.000000e+00> : vector<8x64xf32>
    %42 = tpu.matmul %23, %41, %cst_43 {dimension_numbers = #tpu.dot_dimension_numbers<[1], [0], [0], [1], [0, 0, 1, 1], [], []>} : vector<8x64xbf16>, vector<64x64xbf16>, vector<8x64xf32> -> vector<8x64xf32>
    %43 = arith.addf %32, %42 : vector<8x64xf32>
    %c2_44 = arith.constant 2 : index
    %c0_45 = arith.constant 0 : index
    %c0_46 = arith.constant 0 : index
    %44 = vector.load %arg7[%c2_44, %c0_45, %c0_46] : memref<3x64x64xbf16, #tpu.memory_space<vmem>>, vector<1x64x64xbf16>
    %45 = vector.shape_cast %44 : vector<1x64x64xbf16> to vector<64x64xbf16>
    %cst_47 = arith.constant dense<0.000000e+00> : vector<8x64xf32>
    %46 = tpu.matmul %23, %45, %cst_47 {dimension_numbers = #tpu.dot_dimension_numbers<[1], [0], [0], [1], [0, 0, 1, 1], [], []>} : vector<8x64xbf16>, vector<64x64xbf16>, vector<8x64xf32> -> vector<8x64xf32>
    %47 = arith.addf %35, %46 : vector<8x64xf32>
    %cst_48 = arith.constant 0.000000e+00 : f32
    %48 = vector.broadcast %cst_48 : f32 to vector<1x64xf32>
    %49 = vector.broadcast %26 : vector<1x64xf32> to vector<8x64xf32>
    %50 = arith.addf %43, %49 : vector<8x64xf32>
    %51 = vector.extract_strided_slice %39 {offsets = [0, 0], sizes = [7, 64], strides = [1, 1]} : vector<8x64xf32> to vector<7x64xf32>
    %52 = tpu.concatenate %48, %51 in 0 : vector<1x64xf32>, vector<7x64xf32> -> vector<8x64xf32>
    %53 = arith.addf %50, %52 : vector<8x64xf32>
    %54 = vector.extract_strided_slice %47 {offsets = [1, 0], sizes = [7, 64], strides = [1, 1]} : vector<8x64xf32> to vector<7x64xf32>
    %55 = tpu.concatenate %54, %48 in 0 : vector<7x64xf32>, vector<1x64xf32> -> vector<8x64xf32>
    %56 = arith.addf %53, %55 : vector<8x64xf32>
    %cst_49 = arith.constant 0.000000e+00 : f32
    %57 = vector.broadcast %cst_49 : f32 to vector<8x64xf32>
    %58 = arith.maximumf %56, %57 : vector<8x64xf32>
    %59 = arith.truncf %58 : vector<8x64xf32> to vector<8x64xbf16>
    %c0_50 = arith.constant 0 : index
    %c0_51 = arith.constant 0 : index
    %60 = vector.load %arg10[%c0_50, %c0_51] : memref<1x64xf32, #tpu.memory_space<vmem>>, vector<1x64xf32>
    %c0_52 = arith.constant 0 : index
    %c0_53 = arith.constant 0 : index
    %c0_54 = arith.constant 0 : index
    %61 = vector.load %arg9[%c0_52, %c0_53, %c0_54] : memref<3x64x64xbf16, #tpu.memory_space<vmem>>, vector<1x64x64xbf16>
    %62 = vector.shape_cast %61 : vector<1x64x64xbf16> to vector<64x64xbf16>
    %cst_55 = arith.constant dense<0.000000e+00> : vector<8x64xf32>
    %63 = tpu.matmul %59, %62, %cst_55 {dimension_numbers = #tpu.dot_dimension_numbers<[1], [0], [0], [1], [0, 0, 1, 1], [], []>} : vector<8x64xbf16>, vector<64x64xbf16>, vector<8x64xf32> -> vector<8x64xf32>
    %c1_56 = arith.constant 1 : index
    %c0_57 = arith.constant 0 : index
    %c0_58 = arith.constant 0 : index
    %64 = vector.load %arg9[%c1_56, %c0_57, %c0_58] : memref<3x64x64xbf16, #tpu.memory_space<vmem>>, vector<1x64x64xbf16>
    %65 = vector.shape_cast %64 : vector<1x64x64xbf16> to vector<64x64xbf16>
    %cst_59 = arith.constant dense<0.000000e+00> : vector<8x64xf32>
    %66 = tpu.matmul %59, %65, %cst_59 {dimension_numbers = #tpu.dot_dimension_numbers<[1], [0], [0], [1], [0, 0, 1, 1], [], []>} : vector<8x64xbf16>, vector<64x64xbf16>, vector<8x64xf32> -> vector<8x64xf32>
    %c2_60 = arith.constant 2 : index
    %c0_61 = arith.constant 0 : index
    %c0_62 = arith.constant 0 : index
    %67 = vector.load %arg9[%c2_60, %c0_61, %c0_62] : memref<3x64x64xbf16, #tpu.memory_space<vmem>>, vector<1x64x64xbf16>
    %68 = vector.shape_cast %67 : vector<1x64x64xbf16> to vector<64x64xbf16>
    %cst_63 = arith.constant dense<0.000000e+00> : vector<8x64xf32>
    %69 = tpu.matmul %59, %68, %cst_63 {dimension_numbers = #tpu.dot_dimension_numbers<[1], [0], [0], [1], [0, 0, 1, 1], [], []>} : vector<8x64xbf16>, vector<64x64xbf16>, vector<8x64xf32> -> vector<8x64xf32>
    %cst_64 = arith.constant 0.000000e+00 : f32
    %70 = vector.broadcast %cst_64 : f32 to vector<1x64xf32>
    %71 = vector.broadcast %60 : vector<1x64xf32> to vector<8x64xf32>
    %72 = arith.addf %66, %71 : vector<8x64xf32>
    %73 = vector.extract_strided_slice %63 {offsets = [0, 0], sizes = [7, 64], strides = [1, 1]} : vector<8x64xf32> to vector<7x64xf32>
    %74 = tpu.concatenate %70, %73 in 0 : vector<1x64xf32>, vector<7x64xf32> -> vector<8x64xf32>
    %75 = arith.addf %72, %74 : vector<8x64xf32>
    %76 = vector.extract_strided_slice %69 {offsets = [1, 0], sizes = [7, 64], strides = [1, 1]} : vector<8x64xf32> to vector<7x64xf32>
    %77 = tpu.concatenate %76, %70 in 0 : vector<7x64xf32>, vector<1x64xf32> -> vector<8x64xf32>
    %78 = arith.addf %75, %77 : vector<8x64xf32>
    %cst_65 = arith.constant 0.000000e+00 : f32
    %79 = vector.broadcast %cst_65 : f32 to vector<8x64xf32>
    %80 = arith.maximumf %78, %79 : vector<8x64xf32>
    %c0_66 = arith.constant 0 : index
    %c0_67 = arith.constant 0 : index
    %c0_68 = arith.constant 0 : index
    %81 = vector.load %arg22[%c0_66, %c0_67, %c0_68] : memref<1x8x64xf32, #tpu.memory_space<vmem>>, vector<1x8x64xf32>
    %82 = vector.shape_cast %81 : vector<1x8x64xf32> to vector<8x64xf32>
    %83 = vector.shape_cast %80 : vector<8x64xf32> to vector<1x8x64xf32>
    tpu.vector_store %arg22[%c0_66, %c0_67, %c0_68], %83 {strides = array<i32>} : memref<1x8x64xf32, #tpu.memory_space<vmem>>, vector<1x8x64xf32>,
    %84 = arith.truncf %80 : vector<8x64xf32> to vector<8x64xbf16>
    %c0_69 = arith.constant 0 : index
    %c0_70 = arith.constant 0 : index
    %c0_71 = arith.constant 0 : index
    %85 = vector.load %arg12[%c0_69, %c0_70, %c0_71] : memref<2x64x64xbf16, #tpu.memory_space<vmem>>, vector<1x64x64xbf16>
    %86 = vector.shape_cast %85 : vector<1x64x64xbf16> to vector<64x64xbf16>
    %cst_72 = arith.constant dense<0.000000e+00> : vector<8x64xf32>
    %87 = tpu.matmul %84, %86, %cst_72 {dimension_numbers = #tpu.dot_dimension_numbers<[1], [0], [0], [1], [0, 0, 1, 1], [], []>} : vector<8x64xbf16>, vector<64x64xbf16>, vector<8x64xf32> -> vector<8x64xf32>
    %c0_73 = arith.constant 0 : index
    %c0_74 = arith.constant 0 : index
    %88 = vector.load %arg14[%c0_73, %c0_74] : memref<1x64xf32, #tpu.memory_space<vmem>>, vector<1x64xf32>
    %89 = vector.broadcast %88 : vector<1x64xf32> to vector<8x64xf32>
    %90 = arith.addf %87, %89 : vector<8x64xf32>
    %c1_75 = arith.constant 1 : index
    %c0_76 = arith.constant 0 : index
    %c0_77 = arith.constant 0 : index
    %91 = vector.load %arg12[%c1_75, %c0_76, %c0_77] : memref<2x64x64xbf16, #tpu.memory_space<vmem>>, vector<1x64x64xbf16>
    %92 = vector.shape_cast %91 : vector<1x64x64xbf16> to vector<64x64xbf16>
    %cst_78 = arith.constant dense<0.000000e+00> : vector<8x64xf32>
    %93 = tpu.matmul %84, %92, %cst_78 {dimension_numbers = #tpu.dot_dimension_numbers<[1], [0], [0], [1], [0, 0, 1, 1], [], []>} : vector<8x64xbf16>, vector<64x64xbf16>, vector<8x64xf32> -> vector<8x64xf32>
    %c0_79 = arith.constant 0 : index
    %c0_80 = arith.constant 0 : index
    %94 = vector.load %arg14[%c0_79, %c0_80] : memref<1x64xf32, #tpu.memory_space<vmem>>, vector<1x64xf32>
    %95 = vector.broadcast %94 : vector<1x64xf32> to vector<8x64xf32>
    %96 = arith.addf %93, %95 : vector<8x64xf32>
    %c0_81 = arith.constant 0 : index
    %c0_82 = arith.constant 0 : index
    %c0_83 = arith.constant 0 : index
    %97 = vector.load %arg13[%c0_81, %c0_82, %c0_83] : memref<2x16x8xbf16, #tpu.memory_space<vmem>>, vector<1x16x8xbf16>
    %98 = vector.shape_cast %97 : vector<1x16x8xbf16> to vector<16x8xbf16>
    %99 = arith.truncf %90 : vector<8x64xf32> to vector<8x64xbf16>
    %cst_84 = arith.constant dense<0.000000e+00> : vector<16x64xf32>
    %100 = tpu.matmul %98, %99, %cst_84 {dimension_numbers = #tpu.dot_dimension_numbers<[1], [0], [0], [1], [0, 0, 1, 1], [], []>} : vector<16x8xbf16>, vector<8x64xbf16>, vector<16x64xf32> -> vector<16x64xf32>
    %c1_85 = arith.constant 1 : index
    %c0_86 = arith.constant 0 : index
    %c0_87 = arith.constant 0 : index
    %101 = vector.load %arg13[%c1_85, %c0_86, %c0_87] : memref<2x16x8xbf16, #tpu.memory_space<vmem>>, vector<1x16x8xbf16>
    %102 = vector.shape_cast %101 : vector<1x16x8xbf16> to vector<16x8xbf16>
    %103 = arith.truncf %96 : vector<8x64xf32> to vector<8x64xbf16>
    %cst_88 = arith.constant dense<0.000000e+00> : vector<16x64xf32>
    %104 = tpu.matmul %102, %103, %cst_88 {dimension_numbers = #tpu.dot_dimension_numbers<[1], [0], [0], [1], [0, 0, 1, 1], [], []>} : vector<16x8xbf16>, vector<8x64xbf16>, vector<16x64xf32> -> vector<16x64xf32>
    %105 = arith.addf %100, %104 : vector<16x64xf32>
    %106 = arith.truncf %105 : vector<16x64xf32> to vector<16x64xbf16>
    %c0_89 = arith.constant 0 : index
    %c0_90 = arith.constant 0 : index
    %c0_91 = arith.constant 0 : index
    %107 = vector.load %arg11[%c0_89, %c0_90, %c0_91] : memref<1x16x64xbf16, #tpu.memory_space<vmem>>, vector<1x16x64xbf16>
    %108 = vector.shape_cast %107 : vector<1x16x64xbf16> to vector<16x64xbf16>
    %c0_92 = arith.constant 0 : index
    %c0_93 = arith.constant 0 : index
    %109 = vector.load %arg17[%c0_92, %c0_93] : memref<1x64xf32, #tpu.memory_space<vmem>>, vector<1x64xf32>
    %c0_94 = arith.constant 0 : index
    %c0_95 = arith.constant 0 : index
    %c0_96 = arith.constant 0 : index
    %110 = vector.load %arg15[%c0_94, %c0_95, %c0_96] : memref<3x64x64xbf16, #tpu.memory_space<vmem>>, vector<1x64x64xbf16>
    %111 = vector.shape_cast %110 : vector<1x64x64xbf16> to vector<64x64xbf16>
    %cst_97 = arith.constant dense<0.000000e+00> : vector<16x64xf32>
    %112 = tpu.matmul %108, %111, %cst_97 {dimension_numbers = #tpu.dot_dimension_numbers<[1], [0], [0], [1], [0, 0, 1, 1], [], []>} : vector<16x64xbf16>, vector<64x64xbf16>, vector<16x64xf32> -> vector<16x64xf32>
    %c1_98 = arith.constant 1 : index
    %c0_99 = arith.constant 0 : index
    %c0_100 = arith.constant 0 : index
    %113 = vector.load %arg15[%c1_98, %c0_99, %c0_100] : memref<3x64x64xbf16, #tpu.memory_space<vmem>>, vector<1x64x64xbf16>
    %114 = vector.shape_cast %113 : vector<1x64x64xbf16> to vector<64x64xbf16>
    %cst_101 = arith.constant dense<0.000000e+00> : vector<16x64xf32>
    %115 = tpu.matmul %108, %114, %cst_101 {dimension_numbers = #tpu.dot_dimension_numbers<[1], [0], [0], [1], [0, 0, 1, 1], [], []>} : vector<16x64xbf16>, vector<64x64xbf16>, vector<16x64xf32> -> vector<16x64xf32>
    %c2_102 = arith.constant 2 : index
    %c0_103 = arith.constant 0 : index
    %c0_104 = arith.constant 0 : index
    %116 = vector.load %arg15[%c2_102, %c0_103, %c0_104] : memref<3x64x64xbf16, #tpu.memory_space<vmem>>, vector<1x64x64xbf16>
    %117 = vector.shape_cast %116 : vector<1x64x64xbf16> to vector<64x64xbf16>
    %cst_105 = arith.constant dense<0.000000e+00> : vector<16x64xf32>
    %118 = tpu.matmul %108, %117, %cst_105 {dimension_numbers = #tpu.dot_dimension_numbers<[1], [0], [0], [1], [0, 0, 1, 1], [], []>} : vector<16x64xbf16>, vector<64x64xbf16>, vector<16x64xf32> -> vector<16x64xf32>
    %c0_106 = arith.constant 0 : index
    %c0_107 = arith.constant 0 : index
    %c0_108 = arith.constant 0 : index
    %119 = vector.load %arg16[%c0_106, %c0_107, %c0_108] : memref<3x64x64xbf16, #tpu.memory_space<vmem>>, vector<1x64x64xbf16>
    %120 = vector.shape_cast %119 : vector<1x64x64xbf16> to vector<64x64xbf16>
    %cst_109 = arith.constant dense<0.000000e+00> : vector<16x64xf32>
    %121 = tpu.matmul %106, %120, %cst_109 {dimension_numbers = #tpu.dot_dimension_numbers<[1], [0], [0], [1], [0, 0, 1, 1], [], []>} : vector<16x64xbf16>, vector<64x64xbf16>, vector<16x64xf32> -> vector<16x64xf32>
    %122 = arith.addf %112, %121 : vector<16x64xf32>
    %c1_110 = arith.constant 1 : index
    %c0_111 = arith.constant 0 : index
    %c0_112 = arith.constant 0 : index
    %123 = vector.load %arg16[%c1_110, %c0_111, %c0_112] : memref<3x64x64xbf16, #tpu.memory_space<vmem>>, vector<1x64x64xbf16>
    %124 = vector.shape_cast %123 : vector<1x64x64xbf16> to vector<64x64xbf16>
    %cst_113 = arith.constant dense<0.000000e+00> : vector<16x64xf32>
    %125 = tpu.matmul %106, %124, %cst_113 {dimension_numbers = #tpu.dot_dimension_numbers<[1], [0], [0], [1], [0, 0, 1, 1], [], []>} : vector<16x64xbf16>, vector<64x64xbf16>, vector<16x64xf32> -> vector<16x64xf32>
    %126 = arith.addf %115, %125 : vector<16x64xf32>
    %c2_114 = arith.constant 2 : index
    %c0_115 = arith.constant 0 : index
    %c0_116 = arith.constant 0 : index
    %127 = vector.load %arg16[%c2_114, %c0_115, %c0_116] : memref<3x64x64xbf16, #tpu.memory_space<vmem>>, vector<1x64x64xbf16>
    %128 = vector.shape_cast %127 : vector<1x64x64xbf16> to vector<64x64xbf16>
    %cst_117 = arith.constant dense<0.000000e+00> : vector<16x64xf32>
    %129 = tpu.matmul %106, %128, %cst_117 {dimension_numbers = #tpu.dot_dimension_numbers<[1], [0], [0], [1], [0, 0, 1, 1], [], []>} : vector<16x64xbf16>, vector<64x64xbf16>, vector<16x64xf32> -> vector<16x64xf32>
    %130 = arith.addf %118, %129 : vector<16x64xf32>
    %cst_118 = arith.constant 0.000000e+00 : f32
    %131 = vector.broadcast %cst_118 : f32 to vector<1x64xf32>
    %132 = vector.broadcast %109 : vector<1x64xf32> to vector<16x64xf32>
    %133 = arith.addf %126, %132 : vector<16x64xf32>
    %134 = vector.extract_strided_slice %122 {offsets = [0, 0], sizes = [15, 64], strides = [1, 1]} : vector<16x64xf32> to vector<15x64xf32>
    %135 = tpu.concatenate %131, %134 in 0 : vector<1x64xf32>, vector<15x64xf32> -> vector<16x64xf32>
    %136 = arith.addf %133, %135 : vector<16x64xf32>
    %137 = vector.extract_strided_slice %130 {offsets = [1, 0], sizes = [15, 64], strides = [1, 1]} : vector<16x64xf32> to vector<15x64xf32>
    %138 = tpu.concatenate %137, %131 in 0 : vector<15x64xf32>, vector<1x64xf32> -> vector<16x64xf32>
    %139 = arith.addf %136, %138 : vector<16x64xf32>
    %cst_119 = arith.constant 0.000000e+00 : f32
    %140 = vector.broadcast %cst_119 : f32 to vector<16x64xf32>
    %141 = arith.maximumf %139, %140 : vector<16x64xf32>
    %142 = arith.truncf %141 : vector<16x64xf32> to vector<16x64xbf16>
    %c0_120 = arith.constant 0 : index
    %c0_121 = arith.constant 0 : index
    %143 = vector.load %arg19[%c0_120, %c0_121] : memref<1x64xf32, #tpu.memory_space<vmem>>, vector<1x64xf32>
    %c0_122 = arith.constant 0 : index
    %c0_123 = arith.constant 0 : index
    %c0_124 = arith.constant 0 : index
    %144 = vector.load %arg18[%c0_122, %c0_123, %c0_124] : memref<3x64x64xbf16, #tpu.memory_space<vmem>>, vector<1x64x64xbf16>
    %145 = vector.shape_cast %144 : vector<1x64x64xbf16> to vector<64x64xbf16>
    %cst_125 = arith.constant dense<0.000000e+00> : vector<16x64xf32>
    %146 = tpu.matmul %142, %145, %cst_125 {dimension_numbers = #tpu.dot_dimension_numbers<[1], [0], [0], [1], [0, 0, 1, 1], [], []>} : vector<16x64xbf16>, vector<64x64xbf16>, vector<16x64xf32> -> vector<16x64xf32>
    %c1_126 = arith.constant 1 : index
    %c0_127 = arith.constant 0 : index
    %c0_128 = arith.constant 0 : index
    %147 = vector.load %arg18[%c1_126, %c0_127, %c0_128] : memref<3x64x64xbf16, #tpu.memory_space<vmem>>, vector<1x64x64xbf16>
    %148 = vector.shape_cast %147 : vector<1x64x64xbf16> to vector<64x64xbf16>
    %cst_129 = arith.constant dense<0.000000e+00> : vector<16x64xf32>
    %149 = tpu.matmul %142, %148, %cst_129 {dimension_numbers = #tpu.dot_dimension_numbers<[1], [0], [0], [1], [0, 0, 1, 1], [], []>} : vector<16x64xbf16>, vector<64x64xbf16>, vector<16x64xf32> -> vector<16x64xf32>
    %c2_130 = arith.constant 2 : index
    %c0_131 = arith.constant 0 : index
    %c0_132 = arith.constant 0 : index
    %150 = vector.load %arg18[%c2_130, %c0_131, %c0_132] : memref<3x64x64xbf16, #tpu.memory_space<vmem>>, vector<1x64x64xbf16>
    %151 = vector.shape_cast %150 : vector<1x64x64xbf16> to vector<64x64xbf16>
    %cst_133 = arith.constant dense<0.000000e+00> : vector<16x64xf32>
    %152 = tpu.matmul %142, %151, %cst_133 {dimension_numbers = #tpu.dot_dimension_numbers<[1], [0], [0], [1], [0, 0, 1, 1], [], []>} : vector<16x64xbf16>, vector<64x64xbf16>, vector<16x64xf32> -> vector<16x64xf32>
    %cst_134 = arith.constant 0.000000e+00 : f32
    %153 = vector.broadcast %cst_134 : f32 to vector<1x64xf32>
    %154 = vector.broadcast %143 : vector<1x64xf32> to vector<16x64xf32>
    %155 = arith.addf %149, %154 : vector<16x64xf32>
    %156 = vector.extract_strided_slice %146 {offsets = [0, 0], sizes = [15, 64], strides = [1, 1]} : vector<16x64xf32> to vector<15x64xf32>
    %157 = tpu.concatenate %153, %156 in 0 : vector<1x64xf32>, vector<15x64xf32> -> vector<16x64xf32>
    %158 = arith.addf %155, %157 : vector<16x64xf32>
    %159 = vector.extract_strided_slice %152 {offsets = [1, 0], sizes = [15, 64], strides = [1, 1]} : vector<16x64xf32> to vector<15x64xf32>
    %160 = tpu.concatenate %159, %153 in 0 : vector<15x64xf32>, vector<1x64xf32> -> vector<16x64xf32>
    %161 = arith.addf %158, %160 : vector<16x64xf32>
    %cst_135 = arith.constant 0.000000e+00 : f32
    %162 = vector.broadcast %cst_135 : f32 to vector<16x64xf32>
    %163 = arith.maximumf %161, %162 : vector<16x64xf32>
    %c0_136 = arith.constant 0 : index
    %c0_137 = arith.constant 0 : index
    %c0_138 = arith.constant 0 : index
    %164 = vector.load %arg23[%c0_136, %c0_137, %c0_138] : memref<1x16x64xf32, #tpu.memory_space<vmem>>, vector<1x16x64xf32>
    %165 = vector.shape_cast %164 : vector<1x16x64xf32> to vector<16x64xf32>
    %166 = vector.shape_cast %163 : vector<16x64xf32> to vector<1x16x64xf32>
    tpu.vector_store %arg23[%c0_136, %c0_137, %c0_138], %166 {strides = array<i32>} : memref<1x16x64xf32, #tpu.memory_space<vmem>>, vector<1x16x64xf32>,
    %167 = arith.truncf %163 : vector<16x64xf32> to vector<16x64xbf16>
    %c0_139 = arith.constant 0 : index
    %c0_140 = arith.constant 0 : index
    %168 = vector.load %arg20[%c0_139, %c0_140] : memref<64x32xbf16, #tpu.memory_space<vmem>>, vector<64x32xbf16>
    %cst_141 = arith.constant dense<0.000000e+00> : vector<16x32xf32>
    %169 = tpu.matmul %167, %168, %cst_141 {dimension_numbers = #tpu.dot_dimension_numbers<[1], [0], [0], [1], [0, 0, 1, 1], [], []>} : vector<16x64xbf16>, vector<64x32xbf16>, vector<16x32xf32> -> vector<16x32xf32>
    %c0_142 = arith.constant 0 : index
    %c0_143 = arith.constant 0 : index
    %170 = vector.load %arg21[%c0_142, %c0_143] : memref<1x32xf32, #tpu.memory_space<vmem>>, vector<1x32xf32>
    %171 = vector.broadcast %170 : vector<1x32xf32> to vector<16x32xf32>
    %172 = arith.addf %169, %171 : vector<16x32xf32>
    %c0_144 = arith.constant 0 : index
    %c0_145 = arith.constant 0 : index
    %c0_146 = arith.constant 0 : index
    %173 = vector.load %arg24[%c0_144, %c0_145, %c0_146] : memref<1x16x32xf32, #tpu.memory_space<vmem>>, vector<1x16x32xf32>
    %174 = vector.shape_cast %173 : vector<1x16x32xf32> to vector<16x32xf32>
    %175 = vector.shape_cast %172 : vector<16x32xf32> to vector<1x16x32xf32>
    tpu.vector_store %arg24[%c0_144, %c0_145, %c0_146], %175 {strides = array<i32>} : memref<1x16x32xf32, #tpu.memory_space<vmem>>, vector<1x16x32xf32>,
    return
  }
  func.func @transform_0(%arg0: i32) -> (i32, i32, i32) {
    %c0_i32 = arith.constant 0 : i32
    %c0_i32_0 = arith.constant 0 : i32
    %c0_i32_1 = arith.constant 0 : i32
    return %arg0, %c0_i32, %c0_i32_0 : i32, i32, i32
  }
  func.func @transform_1(%arg0: i32) -> (i32, i32, i32) {
    %c0_i32 = arith.constant 0 : i32
    %c0_i32_0 = arith.constant 0 : i32
    %c0_i32_1 = arith.constant 0 : i32
    return %arg0, %c0_i32, %c0_i32_0 : i32, i32, i32
  }
  func.func @transform_2(%arg0: i32) -> (i32, i32, i32) {
    %c0_i32 = arith.constant 0 : i32
    %c0_i32_0 = arith.constant 0 : i32
    %c0_i32_1 = arith.constant 0 : i32
    %c0_i32_2 = arith.constant 0 : i32
    return %c0_i32, %c0_i32_0, %c0_i32_1 : i32, i32, i32
  }
  func.func @transform_3(%arg0: i32) -> (i32, i32, i32) {
    %c0_i32 = arith.constant 0 : i32
    %c0_i32_0 = arith.constant 0 : i32
    %c0_i32_1 = arith.constant 0 : i32
    %c0_i32_2 = arith.constant 0 : i32
    return %c0_i32, %c0_i32_0, %c0_i32_1 : i32, i32, i32
  }
  func.func @transform_4(%arg0: i32) -> (i32, i32) {
    %c0_i32 = arith.constant 0 : i32
    %c0_i32_0 = arith.constant 0 : i32
    %c0_i32_1 = arith.constant 0 : i32
    return %c0_i32, %c0_i32_0 : i32, i32
  }
  func.func @transform_5(%arg0: i32) -> (i32, i32, i32) {
    %c0_i32 = arith.constant 0 : i32
    %c0_i32_0 = arith.constant 0 : i32
    %c0_i32_1 = arith.constant 0 : i32
    %c0_i32_2 = arith.constant 0 : i32
    return %c0_i32, %c0_i32_0, %c0_i32_1 : i32, i32, i32
  }
  func.func @transform_6(%arg0: i32) -> (i32, i32, i32) {
    %c0_i32 = arith.constant 0 : i32
    %c0_i32_0 = arith.constant 0 : i32
    %c0_i32_1 = arith.constant 0 : i32
    %c0_i32_2 = arith.constant 0 : i32
    return %c0_i32, %c0_i32_0, %c0_i32_1 : i32, i32, i32
  }
  func.func @transform_7(%arg0: i32) -> (i32, i32) {
    %c0_i32 = arith.constant 0 : i32
    %c0_i32_0 = arith.constant 0 : i32
    %c0_i32_1 = arith.constant 0 : i32
    return %c0_i32, %c0_i32_0 : i32, i32
  }
  func.func @transform_8(%arg0: i32) -> (i32, i32, i32) {
    %c0_i32 = arith.constant 0 : i32
    %c0_i32_0 = arith.constant 0 : i32
    %c0_i32_1 = arith.constant 0 : i32
    %c0_i32_2 = arith.constant 0 : i32
    return %c0_i32, %c0_i32_0, %c0_i32_1 : i32, i32, i32
  }
  func.func @transform_9(%arg0: i32) -> (i32, i32) {
    %c0_i32 = arith.constant 0 : i32
    %c0_i32_0 = arith.constant 0 : i32
    %c0_i32_1 = arith.constant 0 : i32
    return %c0_i32, %c0_i32_0 : i32, i32
  }
  func.func @transform_10(%arg0: i32) -> (i32, i32, i32) {
    %c0_i32 = arith.constant 0 : i32
    %c0_i32_0 = arith.constant 0 : i32
    %c0_i32_1 = arith.constant 0 : i32
    return %arg0, %c0_i32, %c0_i32_0 : i32, i32, i32
  }
  func.func @transform_11(%arg0: i32) -> (i32, i32, i32) {
    %c0_i32 = arith.constant 0 : i32
    %c0_i32_0 = arith.constant 0 : i32
    %c0_i32_1 = arith.constant 0 : i32
    %c0_i32_2 = arith.constant 0 : i32
    return %c0_i32, %c0_i32_0, %c0_i32_1 : i32, i32, i32
  }
  func.func @transform_12(%arg0: i32) -> (i32, i32, i32) {
    %c0_i32 = arith.constant 0 : i32
    %c0_i32_0 = arith.constant 0 : i32
    %c0_i32_1 = arith.constant 0 : i32
    %c0_i32_2 = arith.constant 0 : i32
    return %c0_i32, %c0_i32_0, %c0_i32_1 : i32, i32, i32
  }
  func.func @transform_13(%arg0: i32) -> (i32, i32) {
    %c0_i32 = arith.constant 0 : i32
    %c0_i32_0 = arith.constant 0 : i32
    %c0_i32_1 = arith.constant 0 : i32
    return %c0_i32, %c0_i32_0 : i32, i32
  }
  func.func @transform_14(%arg0: i32) -> (i32, i32, i32) {
    %c0_i32 = arith.constant 0 : i32
    %c0_i32_0 = arith.constant 0 : i32
    %c0_i32_1 = arith.constant 0 : i32
    %c0_i32_2 = arith.constant 0 : i32
    return %c0_i32, %c0_i32_0, %c0_i32_1 : i32, i32, i32
  }
  func.func @transform_15(%arg0: i32) -> (i32, i32, i32) {
    %c0_i32 = arith.constant 0 : i32
    %c0_i32_0 = arith.constant 0 : i32
    %c0_i32_1 = arith.constant 0 : i32
    %c0_i32_2 = arith.constant 0 : i32
    return %c0_i32, %c0_i32_0, %c0_i32_1 : i32, i32, i32
  }
  func.func @transform_16(%arg0: i32) -> (i32, i32) {
    %c0_i32 = arith.constant 0 : i32
    %c0_i32_0 = arith.constant 0 : i32
    %c0_i32_1 = arith.constant 0 : i32
    return %c0_i32, %c0_i32_0 : i32, i32
  }
  func.func @transform_17(%arg0: i32) -> (i32, i32, i32) {
    %c0_i32 = arith.constant 0 : i32
    %c0_i32_0 = arith.constant 0 : i32
    %c0_i32_1 = arith.constant 0 : i32
    %c0_i32_2 = arith.constant 0 : i32
    return %c0_i32, %c0_i32_0, %c0_i32_1 : i32, i32, i32
  }
  func.func @transform_18(%arg0: i32) -> (i32, i32) {
    %c0_i32 = arith.constant 0 : i32
    %c0_i32_0 = arith.constant 0 : i32
    %c0_i32_1 = arith.constant 0 : i32
    return %c0_i32, %c0_i32_0 : i32, i32
  }
  func.func @transform_19(%arg0: i32) -> (i32, i32) {
    %c0_i32 = arith.constant 0 : i32
    %c0_i32_0 = arith.constant 0 : i32
    %c0_i32_1 = arith.constant 0 : i32
    return %c0_i32, %c0_i32_0 : i32, i32
  }
  func.func @transform_20(%arg0: i32) -> (i32, i32) {
    %c0_i32 = arith.constant 0 : i32
    %c0_i32_0 = arith.constant 0 : i32
    %c0_i32_1 = arith.constant 0 : i32
    return %c0_i32, %c0_i32_0 : i32, i32
  }
  func.func @transform_21(%arg0: i32) -> (i32, i32, i32) {
    %c0_i32 = arith.constant 0 : i32
    %c0_i32_0 = arith.constant 0 : i32
    %c0_i32_1 = arith.constant 0 : i32
    return %arg0, %c0_i32, %c0_i32_0 : i32, i32, i32
  }
  func.func @transform_22(%arg0: i32) -> (i32, i32, i32) {
    %c0_i32 = arith.constant 0 : i32
    %c0_i32_0 = arith.constant 0 : i32
    %c0_i32_1 = arith.constant 0 : i32
    return %arg0, %c0_i32, %c0_i32_0 : i32, i32, i32
  }
  func.func @transform_23(%arg0: i32) -> (i32, i32, i32) {
    %c0_i32 = arith.constant 0 : i32
    %c0_i32_0 = arith.constant 0 : i32
    %c0_i32_1 = arith.constant 0 : i32
    return %arg0, %c0_i32, %c0_i32_0 : i32, i32, i32
  }
}

</mosaic_0001>

<bundles_post_ra>
// kernel: tile.58
= control target key start
LH: loop header
LB: loop body
LE: loop exit
PB: predicated region body
PF: predicated region fallthrough
CT: control target
= control target key end

     0   :  { %s28_s0 = inlined_call_operand.vmem [shape: f32[4], index: 0, kind: input, shape index: {}]   ;;  %s29_s1 = inlined_call_operand.vmem [shape: f32[16,4], index: 1, kind: output, shape index: {}]  }
   0x1   :  { %v4_v0 = vld [vmem:[%s28_s0] ss:$0 sm:$0xff] }
   0x2   :  { %5 = vst [vmem:[%s29_s1] sm:$0xff] %v4_v0  ;;  %8 = vst [vmem:[%s29_s1 + $0x8] sm:$0xff] %v4_v0 }

// kernel: tile.59
= control target key start
LH: loop header
LB: loop body
LE: loop exit
PB: predicated region body
PF: predicated region fallthrough
CT: control target
= control target key end

     0   :  { %s131_s10 = smov 60   ;;  %s132_s11 = smov 52   ;;  %vm3_vm0 = vcmask 31744   ;;  %vm9_vm1 = vcmask 523744   ;;  %vm15_vm2 = vcmask 490944   ;;  %vm21_vm3 = vcmask 458144   ;;  %s207_s0 = inlined_call_operand.vmem [shape: f32[16,4], index: 0, kind: input, shape index: {}]   ;;  %s208_s1 = inlined_call_operand.vmem [shape: f32[1,64], index: 1, kind: output, shape index: {}]  }
   0x1   :  { %v101_v0 = vld [vmem:[%s207_s0 + $0xf] sm:$0x1]   ;;  %v103_v1 = vld [vmem:[%s207_s0 + $0xd] sm:$0x1]   ;;  %v102_v2 = vld [vmem:[%s207_s0 + $0xe] sm:$0x1]  }
   0x2   :  { %7 = vrot.lane.b32.xlu0 %v101_v0, %s131_s10  ;;  %19 = vrot.lane.b32.xlu1 %v103_v1, %s132_s11  ;;  %v104_v3 = vld [vmem:[%s207_s0 + $0xc] sm:$0x1]   ;;  %s133_s16 = smov 56   ;;  %s134_s17 = smov 48   ;;  %v105_v4 = vld [vmem:[%s207_s0 + $0xb] sm:$0x1]  }
   0x3   :  { %v106_v5 = vld [vmem:[%s207_s0 + $0xa] sm:$0x1]   ;;  %v2_v6 = vld [vmem:[%s207_s0] sm:$0x1]   ;;  %s135_s24 = smov 44   ;;  %s136_s25 = smov 40  }
   0x4   :  { %4 = vst.msk [vmem:[#allocation0] sm:$0x1] %vm3_vm0, %v2_v6   ;;  %v107_v7 = vld [vmem:[%s207_s0 + $0x9] sm:$0x1]   ;;  %v108_v8 = vld [vmem:[%s207_s0 + $0x8] sm:$0x1]  }
   0x5   :  { %s137_s30 = smov 36   ;;  %s138_s2 = smov 32   ;;  %v109_v9 = vld [vmem:[%s207_s0 + $0x7] sm:$0x1]   ;;  %v110_v10 = vld [vmem:[%s207_s0 + $0x6] sm:$0x1]  }
   0x6   :  { %13 = vrot.lane.b32.xlu0 %v102_v2, %s133_s16  ;;  %25 = vrot.lane.b32.xlu1 %v104_v3, %s134_s17  ;;  %s139_s7 = smov 28   ;;  %s140_s8 = smov 24   ;;  %v111_v11 = vld [vmem:[%s207_s0 + $0x5] sm:$0x1]   ;;  %v112_v12 = vld [vmem:[%s207_s0 + $0x4] sm:$0x1]  }
   0x7   :  { %s141_s13 = smov 20   ;;  %s142_s14 = smov 16   ;;  %v113_v13 = vld [vmem:[%s207_s0 + $0x3] sm:$0x1]   ;;  %v114_v14 = vld [vmem:[%s207_s0 + $0x2] sm:$0x1]  }
   0x8   :  { %s143_s19 = smov 12   ;;  %s144_s20 = smov 8   ;;  %v115_v15 = vld [vmem:[%s207_s0 + $0x1] sm:$0x1]   ;;  %vm27_vm4 = vcmask 425344   ;;  %vm33_vm5 = vcmask 392544  }
   0x9   :  { %s145_s0 = smov 4   ;;  %vm39_vm6 = vcmask 359744   ;;  %vm45_vm7 = vcmask 326944   ;;  %vm51_vm8 = vcmask 294144   ;;  %vm57_vm9 = vcmask 261344  }
   0xa   :  { %31 = vrot.lane.b32.xlu0 %v105_v4, %s135_s24  ;;  %37 = vrot.lane.b32.xlu1 %v106_v5, %s136_s25  ;;  %vm63_vm10 = vcmask 228544   ;;  %vm69_vm11 = vcmask 195744   ;;  %vm75_vm12 = vcmask 162944   ;;  %vm81_vm13 = vcmask 130144  }
   0xb   :  { %vm87_vm14 = vcmask 97344   ;;  %vm93_vm15 = vcmask 64544  }
   0xe   :  { %43 = vrot.lane.b32.xlu0 %v107_v7, %s137_s30  ;;  %49 = vrot.lane.b32.xlu1 %v108_v8, %s138_s2 }
  0x12   :  { %55 = vrot.lane.b32.xlu0 %v109_v9, %s139_s7  ;;  %61 = vrot.lane.b32.xlu1 %v110_v10, %s140_s8 }
  0x16   :  { %67 = vrot.lane.b32.xlu0 %v111_v11, %s141_s13  ;;  %73 = vrot.lane.b32.xlu1 %v112_v12, %s142_s14 }
  0x1a   :  { %79 = vrot.lane.b32.xlu0 %v113_v13, %s143_s19  ;;  %85 = vrot.lane.b32.xlu1 %v114_v14, %s144_s20 }
  0x1e   :  { %91 = vrot.lane.b32.xlu0 %v115_v15, %s145_s0 }
  0x74   :  { %v8_v16 = vpop.permute.xlu0 %7   ;;  %v20_v17 = vpop.permute.xlu1 %19  }
  0x75   :  { %10 = vst.msk [vmem:[#allocation0] sm:$0x1] %vm9_vm1, %v8_v16  }
  0x78   :  { %v14_v18 = vpop.permute.xlu0 %13   ;;  %v26_v19 = vpop.permute.xlu1 %25  }
  0x79   :  { %16 = vst.msk [vmem:[#allocation0] sm:$0x1] %vm15_vm2, %v14_v18  }
  0x7a   :  { %22 = vst.msk [vmem:[#allocation0] sm:$0x1] %vm21_vm3, %v20_v17  }
  0x7b   :  { %28 = vst.msk [vmem:[#allocation0] sm:$0x1] %vm27_vm4, %v26_v19  }
  0x7c   :  { %v32_v20 = vpop.permute.xlu0 %31   ;;  %v38_v21 = vpop.permute.xlu1 %37  }
  0x7d   :  { %34 = vst.msk [vmem:[#allocation0] sm:$0x1] %vm33_vm5, %v32_v20  }
  0x7e   :  { %40 = vst.msk [vmem:[#allocation0] sm:$0x1] %vm39_vm6, %v38_v21  }
  0x80   :  { %v44_v22 = vpop.permute.xlu0 %43   ;;  %v50_v23 = vpop.permute.xlu1 %49  }
  0x81   :  { %46 = vst.msk [vmem:[#allocation0] sm:$0x1] %vm45_vm7, %v44_v22  }
  0x82   :  { %52 = vst.msk [vmem:[#allocation0] sm:$0x1] %vm51_vm8, %v50_v23  }
  0x84   :  { %v56_v24 = vpop.permute.xlu0 %55   ;;  %v62_v25 = vpop.permute.xlu1 %61  }
  0x85   :  { %58 = vst.msk [vmem:[#allocation0] sm:$0x1] %vm57_vm9, %v56_v24  }
  0x86   :  { %64 = vst.msk [vmem:[#allocation0] sm:$0x1] %vm63_vm10, %v62_v25  }
  0x88   :  { %v68_v26 = vpop.permute.xlu0 %67   ;;  %v74_v27 = vpop.permute.xlu1 %73  }
  0x89   :  { %70 = vst.msk [vmem:[#allocation0] sm:$0x1] %vm69_vm11, %v68_v26  }
  0x8a   :  { %76 = vst.msk [vmem:[#allocation0] sm:$0x1] %vm75_vm12, %v74_v27  }
  0x8c   :  { %v80_v28 = vpop.permute.xlu0 %79   ;;  %v86_v29 = vpop.permute.xlu1 %85  }
  0x8d   :  { %82 = vst.msk [vmem:[#allocation0] sm:$0x1] %vm81_vm13, %v80_v28  }
  0x8e   :  { %88 = vst.msk [vmem:[#allocation0] sm:$0x1] %vm87_vm14, %v86_v29  }
  0x90   :  { %v92_v30 = vpop.permute.xlu0 %91  }
  0x91   :  { %94 = vst.msk [vmem:[#allocation0] sm:$0x1] %vm93_vm15, %v92_v30  }
  0x98   :  { %v98_v31 = vld [vmem:[#allocation0] sm:$0x1] }
  0x99   :  { %100 = vst [vmem:[%s208_s1] sm:$0x1] %v98_v31 }

// kernel: tile.43
= control target key start
LH: loop header
LB: loop body
LE: loop exit
PB: predicated region body
PF: predicated region fallthrough
CT: control target
= control target key end

     0   :  { %s22_s0 = inlined_call_operand.vmem [shape: f32[8], index: 0, kind: input, shape index: {}]   ;;  %s23_s1 = inlined_call_operand.vmem [shape: f32[8,8], index: 1, kind: output, shape index: {}]  }
   0x1   :  { %v4_v0 = vld [vmem:[%s22_s0] ss:$0 sm:$0xff] }
   0x2   :  { %5 = vst [vmem:[%s23_s1] sm:$0xff] %v4_v0 }

// kernel: tile.44
= control target key start
LH: loop header
LB: loop body
LE: loop exit
PB: predicated region body
PF: predicated region fallthrough
CT: control target
= control target key end

     0   :  { %s67_s10 = smov 56   ;;  %s68_s11 = smov 40   ;;  %vm3_vm0 = vcmask 64512   ;;  %vm9_vm1 = vcmask 523712   ;;  %vm15_vm2 = vcmask 458112   ;;  %vm21_vm3 = vcmask 392512   ;;  %s111_s0 = inlined_call_operand.vmem [shape: f32[8,8], index: 0, kind: input, shape index: {}]   ;;  %s112_s1 = inlined_call_operand.vmem [shape: f32[1,64], index: 1, kind: output, shape index: {}]  }
   0x1   :  { %v53_v0 = vld [vmem:[%s111_s0 + $0x7] sm:$0x1]   ;;  %v55_v1 = vld [vmem:[%s111_s0 + $0x5] sm:$0x1]   ;;  %v54_v2 = vld [vmem:[%s111_s0 + $0x6] sm:$0x1]  }
   0x2   :  { %7 = vrot.lane.b32.xlu0 %v53_v0, %s67_s10  ;;  %19 = vrot.lane.b32.xlu1 %v55_v1, %s68_s11  ;;  %v56_v3 = vld [vmem:[%s111_s0 + $0x4] sm:$0x1]   ;;  %v2_v4 = vld [vmem:[%s111_s0] sm:$0x1]   ;;  %s69_s18 = smov 48   ;;  %s70_s19 = smov 32  }
   0x3   :  { %4 = vst.msk [vmem:[#allocation0] sm:$0x1] %vm3_vm0, %v2_v4   ;;  %v57_v5 = vld [vmem:[%s111_s0 + $0x3] sm:$0x1]   ;;  %v58_v6 = vld [vmem:[%s111_s0 + $0x2] sm:$0x1]  }
   0x4   :  { %s71_s24 = smov 24   ;;  %s72_s25 = smov 16   ;;  %v59_v7 = vld [vmem:[%s111_s0 + $0x1] sm:$0x1]   ;;  %vm27_vm4 = vcmask 326912   ;;  %vm33_vm5 = vcmask 261312  }
   0x5   :  { %s73_s0 = smov 8   ;;  %vm39_vm6 = vcmask 195712   ;;  %vm45_vm7 = vcmask 130112  }
   0x6   :  { %13 = vrot.lane.b32.xlu0 %v54_v2, %s69_s18  ;;  %25 = vrot.lane.b32.xlu1 %v56_v3, %s70_s19 }
   0xa   :  { %31 = vrot.lane.b32.xlu0 %v57_v5, %s71_s24  ;;  %37 = vrot.lane.b32.xlu1 %v58_v6, %s72_s25 }
   0xe   :  { %43 = vrot.lane.b32.xlu0 %v59_v7, %s73_s0 }
  0x74   :  { %v8_v8 = vpop.permute.xlu0 %7   ;;  %v20_v9 = vpop.permute.xlu1 %19  }
  0x75   :  { %10 = vst.msk [vmem:[#allocation0] sm:$0x1] %vm9_vm1, %v8_v8  }
  0x78   :  { %v14_v10 = vpop.permute.xlu0 %13   ;;  %v26_v11 = vpop.permute.xlu1 %25  }
  0x79   :  { %16 = vst.msk [vmem:[#allocation0] sm:$0x1] %vm15_vm2, %v14_v10  }
  0x7a   :  { %22 = vst.msk [vmem:[#allocation0] sm:$0x1] %vm21_vm3, %v20_v9  }
  0x7b   :  { %28 = vst.msk [vmem:[#allocation0] sm:$0x1] %vm27_vm4, %v26_v11  }
  0x7c   :  { %v32_v12 = vpop.permute.xlu0 %31   ;;  %v38_v13 = vpop.permute.xlu1 %37  }
  0x7d   :  { %34 = vst.msk [vmem:[#allocation0] sm:$0x1] %vm33_vm5, %v32_v12  }
  0x7e   :  { %40 = vst.msk [vmem:[#allocation0] sm:$0x1] %vm39_vm6, %v38_v13  }
  0x80   :  { %v44_v14 = vpop.permute.xlu0 %43  }
  0x81   :  { %46 = vst.msk [vmem:[#allocation0] sm:$0x1] %vm45_vm7, %v44_v14  }
  0x88   :  { %v50_v15 = vld [vmem:[#allocation0] sm:$0x1] }
  0x89   :  { %52 = vst [vmem:[%s112_s1] sm:$0x1] %v50_v15 }

// kernel: tile.68
= control target key start
LH: loop header
LB: loop body
LE: loop exit
PB: predicated region body
PF: predicated region fallthrough
CT: control target
= control target key end

     0   :  { %s28_s0 = inlined_call_operand.vmem [shape: f32[2], index: 0, kind: input, shape index: {}]   ;;  %s29_s1 = inlined_call_operand.vmem [shape: f32[16,2], index: 1, kind: output, shape index: {}]  }
   0x1   :  { %v4_v0 = vld [vmem:[%s28_s0] ss:$0 sm:$0xff] }
   0x2   :  { %5 = vst [vmem:[%s29_s1] sm:$0xff] %v4_v0  ;;  %8 = vst [vmem:[%s29_s1 + $0x8] sm:$0xff] %v4_v0 }

// kernel: tile.69
= control target key start
LH: loop header
LB: loop body
LE: loop exit
PB: predicated region body
PF: predicated region fallthrough
CT: control target
= control target key end

     0   :  { %s131_s10 = smov 30   ;;  %s132_s11 = smov 26   ;;  %vm3_vm0 = vcmask 15360   ;;  %vm9_vm1 = vcmask 261360   ;;  %vm15_vm2 = vcmask 244960   ;;  %vm21_vm3 = vcmask 228560   ;;  %s207_s0 = inlined_call_operand.vmem [shape: f32[16,2], index: 0, kind: input, shape index: {}]   ;;  %s208_s1 = inlined_call_operand.vmem [shape: f32[1,32], index: 1, kind: output, shape index: {}]  }
   0x1   :  { %v101_v0 = vld [vmem:[%s207_s0 + $0xf] sm:$0x1]   ;;  %v103_v1 = vld [vmem:[%s207_s0 + $0xd] sm:$0x1]   ;;  %v102_v2 = vld [vmem:[%s207_s0 + $0xe] sm:$0x1]  }
   0x2   :  { %7 = vrot.lane.b32.xlu0 %v101_v0, %s131_s10  ;;  %19 = vrot.lane.b32.xlu1 %v103_v1, %s132_s11  ;;  %v104_v3 = vld [vmem:[%s207_s0 + $0xc] sm:$0x1]   ;;  %s133_s16 = smov 28   ;;  %s134_s17 = smov 24   ;;  %v105_v4 = vld [vmem:[%s207_s0 + $0xb] sm:$0x1]  }
   0x3   :  { %v106_v5 = vld [vmem:[%s207_s0 + $0xa] sm:$0x1]   ;;  %v2_v6 = vld [vmem:[%s207_s0] sm:$0x1]   ;;  %s135_s24 = smov 22   ;;  %s136_s25 = smov 20  }
   0x4   :  { %4 = vst.msk [vmem:[#allocation0] sm:$0x1] %vm3_vm0, %v2_v6   ;;  %v107_v7 = vld [vmem:[%s207_s0 + $0x9] sm:$0x1]   ;;  %v108_v8 = vld [vmem:[%s207_s0 + $0x8] sm:$0x1]  }
   0x5   :  { %s137_s30 = smov 18   ;;  %s138_s2 = smov 16   ;;  %v109_v9 = vld [vmem:[%s207_s0 + $0x7] sm:$0x1]   ;;  %v110_v10 = vld [vmem:[%s207_s0 + $0x6] sm:$0x1]  }
   0x6   :  { %13 = vrot.lane.b32.xlu0 %v102_v2, %s133_s16  ;;  %25 = vrot.lane.b32.xlu1 %v104_v3, %s134_s17  ;;  %s139_s7 = smov 14   ;;  %s140_s8 = smov 12   ;;  %v111_v11 = vld [vmem:[%s207_s0 + $0x5] sm:$0x1]   ;;  %v112_v12 = vld [vmem:[%s207_s0 + $0x4] sm:$0x1]  }
   0x7   :  { %s141_s13 = smov 10   ;;  %s142_s14 = smov 8   ;;  %v113_v13 = vld [vmem:[%s207_s0 + $0x3] sm:$0x1]   ;;  %v114_v14 = vld [vmem:[%s207_s0 + $0x2] sm:$0x1]  }
   0x8   :  { %s143_s19 = smov 6   ;;  %s144_s20 = smov 4   ;;  %v115_v15 = vld [vmem:[%s207_s0 + $0x1] sm:$0x1]   ;;  %vm27_vm4 = vcmask 212160   ;;  %vm33_vm5 = vcmask 195760  }
   0x9   :  { %s145_s0 = smov 2   ;;  %vm39_vm6 = vcmask 179360   ;;  %vm45_vm7 = vcmask 162960   ;;  %vm51_vm8 = vcmask 146560   ;;  %vm57_vm9 = vcmask 130160  }
   0xa   :  { %31 = vrot.lane.b32.xlu0 %v105_v4, %s135_s24  ;;  %37 = vrot.lane.b32.xlu1 %v106_v5, %s136_s25  ;;  %vm63_vm10 = vcmask 113760   ;;  %vm69_vm11 = vcmask 97360   ;;  %vm75_vm12 = vcmask 80960   ;;  %vm81_vm13 = vcmask 64560  }
   0xb   :  { %vm87_vm14 = vcmask 48160   ;;  %vm93_vm15 = vcmask 31760  }
   0xe   :  { %43 = vrot.lane.b32.xlu0 %v107_v7, %s137_s30  ;;  %49 = vrot.lane.b32.xlu1 %v108_v8, %s138_s2 }
  0x12   :  { %55 = vrot.lane.b32.xlu0 %v109_v9, %s139_s7  ;;  %61 = vrot.lane.b32.xlu1 %v110_v10, %s140_s8 }
  0x16   :  { %67 = vrot.lane.b32.xlu0 %v111_v11, %s141_s13  ;;  %73 = vrot.lane.b32.xlu1 %v112_v12, %s142_s14 }
  0x1a   :  { %79 = vrot.lane.b32.xlu0 %v113_v13, %s143_s19  ;;  %85 = vrot.lane.b32.xlu1 %v114_v14, %s144_s20 }
  0x1e   :  { %91 = vrot.lane.b32.xlu0 %v115_v15, %s145_s0 }
  0x74   :  { %v8_v16 = vpop.permute.xlu0 %7   ;;  %v20_v17 = vpop.permute.xlu1 %19  }
  0x75   :  { %10 = vst.msk [vmem:[#allocation0] sm:$0x1] %vm9_vm1, %v8_v16  }
  0x78   :  { %v14_v18 = vpop.permute.xlu0 %13   ;;  %v26_v19 = vpop.permute.xlu1 %25  }
  0x79   :  { %16 = vst.msk [vmem:[#allocation0] sm:$0x1] %vm15_vm2, %v14_v18  }
  0x7a   :  { %22 = vst.msk [vmem:[#allocation0] sm:$0x1] %vm21_vm3, %v20_v17  }
  0x7b   :  { %28 = vst.msk [vmem:[#allocation0] sm:$0x1] %vm27_vm4, %v26_v19  }
  0x7c   :  { %v32_v20 = vpop.permute.xlu0 %31   ;;  %v38_v21 = vpop.permute.xlu1 %37  }
  0x7d   :  { %34 = vst.msk [vmem:[#allocation0] sm:$0x1] %vm33_vm5, %v32_v20  }
  0x7e   :  { %40 = vst.msk [vmem:[#allocation0] sm:$0x1] %vm39_vm6, %v38_v21  }
  0x80   :  { %v44_v22 = vpop.permute.xlu0 %43   ;;  %v50_v23 = vpop.permute.xlu1 %49  }
  0x81   :  { %46 = vst.msk [vmem:[#allocation0] sm:$0x1] %vm45_vm7, %v44_v22  }
  0x82   :  { %52 = vst.msk [vmem:[#allocation0] sm:$0x1] %vm51_vm8, %v50_v23  }
  0x84   :  { %v56_v24 = vpop.permute.xlu0 %55   ;;  %v62_v25 = vpop.permute.xlu1 %61  }
  0x85   :  { %58 = vst.msk [vmem:[#allocation0] sm:$0x1] %vm57_vm9, %v56_v24  }
  0x86   :  { %64 = vst.msk [vmem:[#allocation0] sm:$0x1] %vm63_vm10, %v62_v25  }
  0x88   :  { %v68_v26 = vpop.permute.xlu0 %67   ;;  %v74_v27 = vpop.permute.xlu1 %73  }
  0x89   :  { %70 = vst.msk [vmem:[#allocation0] sm:$0x1] %vm69_vm11, %v68_v26  }
  0x8a   :  { %76 = vst.msk [vmem:[#allocation0] sm:$0x1] %vm75_vm12, %v74_v27  }
  0x8c   :  { %v80_v28 = vpop.permute.xlu0 %79   ;;  %v86_v29 = vpop.permute.xlu1 %85  }
  0x8d   :  { %82 = vst.msk [vmem:[#allocation0] sm:$0x1] %vm81_vm13, %v80_v28  }
  0x8e   :  { %88 = vst.msk [vmem:[#allocation0] sm:$0x1] %vm87_vm14, %v86_v29  }
  0x90   :  { %v92_v30 = vpop.permute.xlu0 %91  }
  0x91   :  { %94 = vst.msk [vmem:[#allocation0] sm:$0x1] %vm93_vm15, %v92_v30  }
  0x98   :  { %v98_v31 = vld [vmem:[#allocation0] sm:$0x1] }
  0x99   :  { %100 = vst [vmem:[%s208_s1] sm:$0x1] %v98_v31 }

// kernel: unet_decoder_forward.1
= control target key start
LH: loop header
LB: loop body
LE: loop exit
PB: predicated region body
PF: predicated region fallthrough
CT: control target
= control target key end

     0   :  { %s4454_s0 = inlined_call_operand.vmem [shape: bf16[2,4,64], index: 0, kind: input, shape index: {}]   ;;  %s4455_s1 = inlined_call_operand.vmem [shape: bf16[2,8,64], index: 1, kind: input, shape index: {}]   ;;  %s4456_s2 = inlined_call_operand.vmem [shape: bf16[2,64,64], index: 2, kind: input, shape index: {}]   ;;  %s4457_s3 = inlined_call_operand.vmem [shape: bf16[2,8,4], index: 3, kind: input, shape index: {}]   ;;  %s4458_s4 = inlined_call_operand.vmem [shape: f32[1,64], index: 4, kind: input, shape index: {}]   ;;  %s4459_s5 = inlined_call_operand.vmem [shape: bf16[3,64,64], index: 5, kind: input, shape index: {}]   ;;  %s4460_s6 = inlined_call_operand.vmem [shape: bf16[3,64,64], index: 6, kind: input, shape index: {}]   ;;  %s4461_s7 = inlined_call_operand.vmem [shape: f32[1,64], index: 7, kind: input, shape index: {}]   ;;  %s4462_s8 = inlined_call_operand.vmem [shape: bf16[3,64,64], index: 8, kind: input, shape index: {}]   ;;  %s4463_s9 = inlined_call_operand.vmem [shape: f32[1,64], index: 9, kind: input, shape index: {}]   ;;  %s4464_s10 = inlined_call_operand.vmem [shape: bf16[2,16,64], index: 10, kind: input, shape index: {}]   ;;  %s4465_s11 = inlined_call_operand.vmem [shape: bf16[2,64,64], index: 11, kind: input, shape index: {}]   ;;  %s4466_s12 = inlined_call_operand.vmem [shape: bf16[2,16,8], index: 12, kind: input, shape index: {}]   ;;  %s4467_s13 = inlined_call_operand.vmem [shape: f32[1,64], index: 13, kind: input, shape index: {}]   ;;  %s4468_s14 = inlined_call_operand.vmem [shape: bf16[3,64,64], index: 14, kind: input, shape index: {}]   ;;  %s4469_s15 = inlined_call_operand.vmem [shape: bf16[3,64,64], index: 15, kind: input, shape index: {}]   ;;  %s4470_s16 = inlined_call_operand.vmem [shape: f32[1,64], index: 16, kind: input, shape index: {}]   ;;  %s4471_s17 = inlined_call_operand.vmem [shape: bf16[3,64,64], index: 17, kind: input, shape index: {}]   ;;  %s4472_s18 = inlined_call_operand.vmem [shape: f32[1,64], index: 18, kind: input, shape index: {}]   ;;  %s4473_s19 = inlined_call_operand.vmem [shape: bf16[64,32], index: 19, kind: input, shape index: {}]   ;;  %s4474_s20 = inlined_call_operand.vmem [shape: f32[1,32], index: 20, kind: input, shape index: {}]   ;;  %s4475_s21 = inlined_call_operand.vmem [shape: f32[2,8,64], index: 21, kind: output, shape index: {0}]   ;;  %s4476_s22 = inlined_call_operand.vmem [shape: f32[2,16,64], index: 22, kind: output, shape index: {1}]   ;;  %s4477_s23 = inlined_call_operand.vmem [shape: f32[2,16,32], index: 23, kind: output, shape index: {2}]  }
   0x1   :  { %4484 = sst [smem:[#allocation2_spill]] %s4454_s0 }
   0x2   :  { %4485 = sst [smem:[#allocation3_spill]] %s4455_s1 }
   0x3   :  { %4486 = sst [smem:[#allocation4_spill]] %s4456_s2 }
   0x4   :  { %4487 = sst [smem:[#allocation5_spill]] %s4457_s3 }
   0x5   :  { %4488 = sst [smem:[#allocation6_spill]] %s4458_s4  ;;  %s3915_s4 = smov 0  }
   0x6   :  { %4489 = sst [smem:[#allocation7_spill]] %s4459_s5 }
   0x7   :  { %4490 = sst [smem:[#allocation8_spill]] %s4460_s6 }
   0x8   :  { %4491 = sst [smem:[#allocation9_spill]] %s4461_s7 }
   0x9 LB: > { %s2973_s30 = sadd.s32 4294967295, %s3791_s4   ;;  %p2977_p0 = scmp.ge.s32.totalorder %s3791_s4, 1  ;;  %s3791_s4 = sphi %s3915_s4, %s34_s4  }
   0xa   : > { %p660_p1 = scmp.lt.s32.totalorder %s3791_s4, 3 }
   0xc   : > { %p661_p2 = pnand %p2977_p0, %p660_p1 }
   0xd   : > { %s4492_s5 = sld [smem:[#allocation4_spill]] (!%p661_p2)  ;;  %v3793_v1 = vmov (!%p661_p2), 0.0   ;;  %vm3794_vm0 = vmmov (!%p661_p2), 0   ;;  %p741_p3 = scmp.lt.s32.totalorder (!%p661_p2), %s2973_s30, 1  ;;  %vm809_vm1 = vcmask (!%p661_p2), 523264   ;;  %vm935_vm2 = vcmask (!%p661_p2), 1041408  }
   0xe   : > { %664 = sbr.rel (%p661_p2) target bundleno = 2153 (0x869), region = 104  ;;  %3359 = vmatprep.subr.bf16.mxu0 (!%p661_p2), %v3793_v1  ;;  %3371 = vmatprep.subr.bf16.mxu1 (!%p661_p2), %v3793_v1  ;;  %s4493_s7 = sld [smem:[#allocation2_spill]] (!%p661_p2)  ;;  %vm931_vm3 = vcmask (!%p661_p2), 31744   ;;  %v3722_v62 = vld [vmem:[%s4462_s8] sm:$0xff] (!%p661_p2)   ;;  %vm1480_vm4 = vcmask (!%p661_p2), 1040384   ;;  %vm1486_vm5 = vcmask (!%p661_p2), 1046528  }
   0xf   : > { %3367 = vmatprep.mubr.msk.bf16.mxu0 (!%p661_p2), %vm3794_vm0, %v3793_v1  ;;  %3379 = vmatprep.mubr.msk.bf16.mxu1 (!%p661_p2), %vm3794_vm0, %v3793_v1  ;;  %s4494_s0 = sld [smem:[#allocation6_spill]] (!%p661_p2)  ;;  %s4495_s1 = sld [smem:[#allocation5_spill]] (!%p661_p2)  ;;  %v3723_v63 = vld [vmem:[%s4462_s8 + $0x20] sm:$0xff] (!%p661_p2)   ;;  %vm1903_vm6 = vcmask (!%p661_p2), 1043456   ;;  %vm1899_vm7 = vcmask (!%p661_p2), 64512   ;;  %vm2827_vm8 = vcmask (!%p661_p2), 261120  }
  0x10   : > { %s4496_s6 = sld [smem:[#allocation8_spill]] (!%p661_p2)  ;;  %s4497_s26 = sld [smem:[#allocation7_spill]] (!%p661_p2) }
  0x11   : > { %s4498_s25 = sld [smem:[#allocation3_spill]] (!%p661_p2) }
  0x13   : > { %v3690_v0 = vld [vmem:[%s4492_s5] sm:$0xff] (!%p661_p2)   ;;  %v3692_v3 = vld [vmem:[%s4492_s5 + $0x8] sm:$0xff] (!%p661_p2)   ;;  %v3694_v5 = vld [vmem:[%s4492_s5 + $0x10] sm:$0xff] (!%p661_p2)  }
  0x14   : > { %v3691_v2 = vld [vmem:[%s4492_s5 + $0x20] sm:$0xff] (!%p661_p2)   ;;  %3360 = vmatpush3.bf16.msra.mxu0 (!%p661_p2), %v3690_v0  ;;  %v3693_v4 = vld [vmem:[%s4492_s5 + $0x28] sm:$0xff] (!%p661_p2)   ;;  %v3695_v6 = vld [vmem:[%s4492_s5 + $0x30] sm:$0xff] (!%p661_p2)  }
  0x15   : > { %3372 = vmatpush3.bf16.msra.mxu1 %v3691_v2  ;;  %3361 = vmatprep.subr.bf16.mxu0 %v3793_v1  ;;  %s4501_s30 = smov (!%p741_p3, %s2973_s30), 1  ;;  %v3696_v7 = vld [vmem:[%s4492_s5 + $0x18] sm:$0xff]   ;;  %v2987_v10 = vld [vmem:[%s4494_s0] ss:$0 sm:$0xff]  ;;  %v3006_v27 = vld [vmem:[%s4495_s1 + $0x4] sm:$0xf] }
  0x16   : > { %3373 = vmatprep.subr.bf16.mxu1 %v3793_v1  ;;  %s2978_s3 = sshll.u32 %s4501_s30, 1  ;;  %v3697_v8 = vld [vmem:[%s4492_s5 + $0x38] sm:$0xff]   ;;  %v926_v25 = vld [vmem:[%s4495_s1] sm:$0xf]  ;;  %v3701_v29 = vld [vmem:[%s4496_s6 + $0x28] sm:$0xff]   ;;  %s2979_s27 = sshll.u32 %s4501_s30, 2 }
  0x17   : > { %s744_s28 = scalar_lea.vmem %s4493_s7, %s2978_s3  ;;  %v3699_v26 = vld [vmem:[%s4496_s6 + $0x20] sm:$0xff]   ;;  %v3700_v30 = vld [vmem:[%s4496_s6 + $0x8] sm:$0xff]   ;;  %v3703_v31 = vld [vmem:[%s4496_s6 + $0x30] sm:$0xff]   ;;  %s748_s2 = scalar_lea.vmem %s4498_s25, %s2979_s27 }
  0x18   : > { %3362 = vmatpush3.bf16.msra.mxu0 %v3692_v3  ;;  %v769_v9 = vld [vmem:[%s744_s28] sm:$0x3]  ;;  %v3702_v32 = vld [vmem:[%s4496_s6 + $0x10] sm:$0xff]   ;;  %v3704_v33 = vld [vmem:[%s4496_s6 + $0x18] sm:$0xff]   ;;  %s3233_s28 = sshll.u32 %s4501_s30, 3  ;;  %s3234_s24 = sshll.u32 %s4501_s30, 4 }
  0x19   : > { %3374 = vmatpush3.bf16.msra.mxu1 %v3693_v4  ;;  %3363 = vmatprep.subr.bf16.mxu0 %v3793_v1  ;;  %v3698_v28 = vld [vmem:[%s4496_s6] sm:$0xff]   ;;  %v3705_v34 = vld [vmem:[%s4496_s6 + $0x38] sm:$0xff]   ;;  %v3708_v47 = vld [vmem:[%s4497_s26 + $0x8] sm:$0xff]   ;;  %s4183_s3 = scalar_lea.vmem %s4464_s10, %s3233_s28  ;;  %s757_s5 = scalar_lea.vmem %s4475_s21, %s3233_s28 }
  0x1a   : > { %3375 = vmatprep.subr.bf16.mxu1 %v3793_v1  ;;  %v3706_v43 = vld [vmem:[%s4497_s26] sm:$0xff]   ;;  %v3709_v48 = vld [vmem:[%s4497_s26 + $0x28] sm:$0xff]   ;;  %v3710_v49 = vld [vmem:[%s4497_s26 + $0x10] sm:$0xff]   ;;  %s762_s7 = scalar_lea.vmem %s4476_s22, %s3234_s24 }
  0x1b   : > { %v3707_v44 = vld [vmem:[%s4497_s26 + $0x20] sm:$0xff]   ;;  %v3711_v50 = vld [vmem:[%s4497_s26 + $0x30] sm:$0xff]   ;;  %v3712_v51 = vld [vmem:[%s4497_s26 + $0x18] sm:$0xff]  }
  0x1c   : > { %3364 = vmatpush3.bf16.msra.mxu0 %v3694_v5  ;;  %v3713_v52 = vld [vmem:[%s4497_s26 + $0x38] sm:$0xff]   ;;  %v1026_v53 = vld [vmem:[%s748_s2] sm:$0xf]  ;;  %v3715_v55 = vld [vmem:[%s4496_s6 + $0x48] sm:$0xff]   ;;  %s4499_s2 = sld [smem:[#allocation9_spill]] }
  0x1d   : > { %3376 = vmatpush3.bf16.msra.mxu1 %v3695_v6  ;;  %3365 = vmatprep.subr.bf16.mxu0 %v3793_v1  ;;  %v3714_v54 = vld [vmem:[%s4496_s6 + $0x40] sm:$0xff]   ;;  %v3716_v56 = vld [vmem:[%s4496_s6 + $0x50] sm:$0xff]   ;;  %v3717_v57 = vld [vmem:[%s4496_s6 + $0x58] sm:$0xff]  }
  0x1e   : > { %3377 = vmatprep.subr.bf16.mxu1 %v3793_v1  ;;  %v3718_v58 = vld [vmem:[%s4497_s26 + $0x40] sm:$0xff]   ;;  %v3719_v59 = vld [vmem:[%s4497_s26 + $0x48] sm:$0xff]   ;;  %v3720_v60 = vld [vmem:[%s4497_s26 + $0x50] sm:$0xff]  }
  0x1f   : > { %v3721_v61 = vld [vmem:[%s4497_s26 + $0x58] sm:$0xff]   ;;  %v3724_v0 = vld [vmem:[%s4462_s8 + $0x8] sm:$0xff]   ;;  %v3726_v3 = vld [vmem:[%s4462_s8 + $0x10] sm:$0xff]  }
  0x20   : > { %3366 = vmatpush3.bf16.msra.mxu0 %v3696_v7  ;;  %v3725_v2 = vld [vmem:[%s4462_s8 + $0x28] sm:$0xff]   ;;  %v3727_v4 = vld [vmem:[%s4462_s8 + $0x30] sm:$0xff]   ;;  %v3728_v5 = vld [vmem:[%s4462_s8 + $0x18] sm:$0xff]  }
  0x21   : > { %3378 = vmatpush3.bf16.msra.mxu1 %v3697_v8  ;;  %3389 = vmatprep.subr.bf16.mxu0 %v3793_v1  ;;  %v3729_v6 = vld [vmem:[%s4462_s8 + $0x38] sm:$0xff]  }
  0x22   : > { %3383 = vmatprep.subr.bf16.mxu1 %v3793_v1 }
  0x23   : > { %3368 = vmatmul.mubr.msk.bf16.vlgmr.msra.gmra.mrb[0].mxu0 %vm809_vm1, %v769_v9 }
  0x24   : > { %3380 = vmatmul.mubr.msk.bf16.vlgmr.msra.gmra.mrb[0].mxu1 %vm809_vm1, %v769_v9  ;;  %3391 = vmatprep.mubr.msk.bf16.mxu0 %vm3794_vm0, %v3793_v1 }
  0x25   : > { %3385 = vmatprep.mubr.msk.bf16.mxu1 %vm3794_vm0, %v3793_v1 }
  0xf6   : > { %v847_v11 = vpop.f32.mrb[0].mxu0 }
  0xf7   : > { %v848_v12 = vadd.f32 %v2987_v10, %v847_v11  ;;  %v920_v13 = vpop.f32.mrb[0].mxu1  ;;  %v3369_v14 = vpop.f32.mrb[1].mxu0 }
  0xf8   : > { %v921_v15 = vadd.f32 %v2987_v10, %v920_v13  ;;  %v3381_v16 = vpop.f32.mrb[1].mxu1  ;;  %v850_v17 = vpop.f32.mrb[2].mxu0 }
  0xf9   : > { %v927_v18 = vpack.c.bf16 %v848_v12, %v848_v12  ;;  %v923_v19 = vpop.f32.mrb[2].mxu1  ;;  %v3370_v20 = vpop.f32.mrb[3].mxu0  ;;  %v3071_v12 = vld [vmem:[%s4499_s2] ss:$0 sm:$0xff] }
  0xfa   : > { %v930_v21 = vpack.c.bf16 %v921_v15, %v921_v15  ;;  %v3382_v22 = vpop.f32.mrb[3].mxu1 }
  0xfb   : > { %v983_v23 = vsel %vm935_vm2, %v927_v18, 0 }
  0xfc   : > { %v937_v24 = vsel %vm935_vm2, %v930_v21, 0  ;;  %3390 = vmatpush3.bf16.msra.mxu0 %v983_v23 }
  0xfd   : > { %3384 = vmatpush3.bf16.msra.mxu1 %v937_v24  ;;  %3419 = vmatprep.subr.bf16.mxu0 %v3793_v1 }
  0xfe   : > { %3395 = vmatprep.subr.bf16.mxu1 %v3793_v1 }
  0xff   : > { %3392 = vmatmul.mubr.msk.bf16.vlgmr.msra.gmra.mrb[4].mxu0 %vm931_vm3, %v926_v25 }
 0x100   : > { %3386 = vmatmul.mubr.msk.bf16.vlgmr.msra.gmra.mrb[4].mxu1 %vm931_vm3, %v3006_v27  ;;  %3420 = vmatpush3.bf16.msra.mxu0 %v3699_v26 }
 0x101   : > { %3396 = vmatpush3.bf16.msra.mxu1 %v3698_v28  ;;  %3421 = vmatprep.subr.bf16.mxu0 %v3793_v1 }
 0x102   : > { %3397 = vmatprep.subr.bf16.mxu1 %v3793_v1  ;;  %3403 = vmatprep.mubr.msk.bf16.mxu1 %vm3794_vm0, %v3793_v1 }
 0x103   : > { %3427 = vmatprep.mubr.msk.bf16.mxu0 %vm3794_vm0, %v3793_v1 }
 0x104   : > { %3422 = vmatpush3.bf16.msra.mxu0 %v3701_v29 }
 0x105   : > { %3398 = vmatpush3.bf16.msra.mxu1 %v3700_v30  ;;  %3423 = vmatprep.subr.bf16.mxu0 %v3793_v1 }
 0x106   : > { %3399 = vmatprep.subr.bf16.mxu1 %v3793_v1 }
 0x108   : > { %3424 = vmatpush3.bf16.msra.mxu0 %v3703_v31 }
 0x109   : > { %3400 = vmatpush3.bf16.msra.mxu1 %v3702_v32  ;;  %3425 = vmatprep.subr.bf16.mxu0 %v3793_v1 }
 0x10a   : > { %3401 = vmatprep.subr.bf16.mxu1 %v3793_v1 }
 0x10c   : > { %3426 = vmatpush3.bf16.msra.mxu0 %v3705_v34 }
 0x10d   : > { %3402 = vmatpush3.bf16.msra.mxu1 %v3704_v33  ;;  %3431 = vmatprep.subr.bf16.mxu0 %v3793_v1  ;;  %v3730_v33 = vld [vmem:[%s4462_s8 + $0x40] sm:$0xff]  }
 0x10e   : > { %3407 = vmatprep.subr.bf16.mxu1 %v3793_v1 }
 0x1d2   : > { %v1019_v35 = vpop.f32.mrb[4].mxu0 }
 0x1d3   : > { %v973_v36 = vpop.f32.mrb[4].mxu1  ;;  %v3393_v37 = vpop.f32.mrb[5].mxu0 }
 0x1d4   : > { %v1020_v38 = vadd.f32 %v1019_v35, %v973_v36  ;;  %v3387_v39 = vpop.f32.mrb[5].mxu1  ;;  %v1022_v40 = vpop.f32.mrb[6].mxu0  ;;  %v3731_v35 = vld [vmem:[%s4462_s8 + $0x48] sm:$0xff]   ;;  %v3732_v36 = vld [vmem:[%s4462_s8 + $0x50] sm:$0xff]   ;;  %v3733_v37 = vld [vmem:[%s4462_s8 + $0x58] sm:$0xff]  }
 0x1d5   : > { %v976_v41 = vpop.f32.mrb[6].mxu1  ;;  %v3394_v42 = vpop.f32.mrb[7].mxu0  ;;  %v3735_v39 = vld [vmem:[%s4465_s11 + $0x20] sm:$0xff]   ;;  %v3736_v40 = vld [vmem:[%s4465_s11 + $0x8] sm:$0xff]  }
 0x1d6   : > { %v1025_v45 = vpack.c.bf16 %v1020_v38, %v1020_v38  ;;  %v3388_v46 = vpop.f32.mrb[7].mxu1  ;;  %v3734_v38 = vld [vmem:[%s4465_s11] sm:$0xff]   ;;  %v3737_v41 = vld [vmem:[%s4465_s11 + $0x28] sm:$0xff]   ;;  %v3738_v42 = vld [vmem:[%s4465_s11 + $0x10] sm:$0xff]  }
 0x1d7   : > { %v3098_v46 = vld [vmem:[%s4463_s9] ss:$0 sm:$0xff] }
 0x1d8   : > { %3404 = vmatmul.mubr.msk.bf16.vlgmr.msra.gmra.mrb[8].mxu1 %vm809_vm1, %v1025_v45  ;;  %3428 = vmatmul.mubr.msk.bf16.vlgmr.msra.gmra.mrb[8].mxu0 %vm809_vm1, %v1025_v45 }
 0x1d9   : > { %3408 = vmatpush3.bf16.msra.mxu1 %v3706_v43  ;;  %3432 = vmatpush3.bf16.msra.mxu0 %v3707_v44  ;;  %v3739_v43 = vld [vmem:[%s4465_s11 + $0x30] sm:$0xff]   ;;  %v3740_v44 = vld [vmem:[%s4465_s11 + $0x18] sm:$0xff]  }
 0x1da   : > { %3409 = vmatprep.subr.bf16.mxu1 %v3793_v1  ;;  %3433 = vmatprep.subr.bf16.mxu0 %v3793_v1 }
 0x1db   : > { %3415 = vmatprep.mubr.msk.bf16.mxu1 %vm3794_vm0, %v3793_v1  ;;  %3439 = vmatprep.mubr.msk.bf16.mxu0 %vm3794_vm0, %v3793_v1 }
 0x1dd   : > { %3410 = vmatpush3.bf16.msra.mxu1 %v3708_v47  ;;  %3434 = vmatpush3.bf16.msra.mxu0 %v3709_v48 }
 0x1de   : > { %3411 = vmatprep.subr.bf16.mxu1 %v3793_v1  ;;  %3435 = vmatprep.subr.bf16.mxu0 %v3793_v1 }
 0x1e1   : > { %3412 = vmatpush3.bf16.msra.mxu1 %v3710_v49  ;;  %3436 = vmatpush3.bf16.msra.mxu0 %v3711_v50 }
 0x1e2   : > { %3413 = vmatprep.subr.bf16.mxu1 %v3793_v1  ;;  %3437 = vmatprep.subr.bf16.mxu0 %v3793_v1 }
 0x1e5   : > { %3414 = vmatpush3.bf16.msra.mxu1 %v3712_v51  ;;  %3438 = vmatpush3.bf16.msra.mxu0 %v3713_v52 }
 0x1e6   : > { %3443 = vmatprep.subr.bf16.mxu1 %v3793_v1  ;;  %3467 = vmatprep.subr.bf16.mxu0 %v3793_v1 }
 0x1e8   : > { %3416 = vmatmul.mubr.msk.bf16.vlgmr.msra.gmra.mrb[8].mxu1 %vm809_vm1, %v1026_v53  ;;  %3440 = vmatmul.mubr.msk.bf16.vlgmr.msra.gmra.mrb[12].mxu0 %vm809_vm1, %v1026_v53 }
 0x1e9   : > { %3444 = vmatpush3.bf16.msra.mxu1 %v3714_v54  ;;  %3451 = vmatprep.mubr.msk.bf16.mxu1 %vm3794_vm0, %v3793_v1 }
 0x1ea   : > { %3445 = vmatprep.subr.bf16.mxu1 %v3793_v1  ;;  %3475 = vmatprep.mubr.msk.bf16.mxu0 %vm3794_vm0, %v3793_v1 }
 0x1eb   : > { %3468 = vmatpush3.bf16.msra.mxu0 %v3722_v62 }
 0x1ec   : > { %3469 = vmatprep.subr.bf16.mxu0 %v3793_v1 }
 0x1ed   : > { %3446 = vmatpush3.bf16.msra.mxu1 %v3715_v55 }
 0x1ee   : > { %3447 = vmatprep.subr.bf16.mxu1 %v3793_v1 }
 0x1ef   : > { %3470 = vmatpush3.bf16.msra.mxu0 %v3724_v0 }
 0x1f0   : > { %3471 = vmatprep.subr.bf16.mxu0 %v3793_v1 }
 0x1f1   : > { %3448 = vmatpush3.bf16.msra.mxu1 %v3716_v56 }
 0x1f2   : > { %3449 = vmatprep.subr.bf16.mxu1 %v3793_v1 }
 0x1f3   : > { %3472 = vmatpush3.bf16.msra.mxu0 %v3726_v3 }
 0x1f4   : > { %3473 = vmatprep.subr.bf16.mxu0 %v3793_v1 }
 0x1f5   : > { %3450 = vmatpush3.bf16.msra.mxu1 %v3717_v57 }
 0x1f6   : > { %3455 = vmatprep.subr.bf16.mxu1 %v3793_v1 }
 0x1f7   : > { %3474 = vmatpush3.bf16.msra.mxu0 %v3728_v5  ;;  %v3744_v5 = vld [vmem:[%s4469_s15] sm:$0xff]  }
 0x1f8   : > { %3452 = vmatmul.mubr.msk.bf16.vlgmr.msra.gmra.mrb[12].mxu1 %vm809_vm1, %v1025_v45  ;;  %3479 = vmatprep.subr.bf16.mxu0 %v3793_v1  ;;  %v3741_v45 = vld [vmem:[%s4465_s11 + $0x38] sm:$0xff]  }
 0x1f9   : > { %3456 = vmatpush3.bf16.msra.mxu1 %v3718_v58  ;;  %3463 = vmatprep.mubr.msk.bf16.mxu1 %vm3794_vm0, %v3793_v1 }
 0x1fa   : > { %3457 = vmatprep.subr.bf16.mxu1 %v3793_v1 }
 0x1fd   : > { %3458 = vmatpush3.bf16.msra.mxu1 %v3719_v59 }
 0x1fe   : > { %3459 = vmatprep.subr.bf16.mxu1 %v3793_v1 }
 0x201   : > { %3460 = vmatpush3.bf16.msra.mxu1 %v3720_v60 }
 0x202   : > { %3461 = vmatprep.subr.bf16.mxu1 %v3793_v1 }
 0x205   : > { %3462 = vmatpush3.bf16.msra.mxu1 %v3721_v61 }
 0x206   : > { %3491 = vmatprep.subr.bf16.mxu1 %v3793_v1 }
 0x208   : > { %3464 = vmatmul.mubr.msk.bf16.vlgmr.msra.gmra.mrb[12].mxu1 %vm809_vm1, %v1026_v53 }
 0x209   : > { %3499 = vmatprep.mubr.msk.bf16.mxu1 %vm3794_vm0, %v3793_v1  ;;  %3492 = vmatpush3.bf16.msra.mxu1 %v3723_v63 }
 0x20a   : > { %3493 = vmatprep.subr.bf16.mxu1 %v3793_v1 }
 0x20d   : > { %3494 = vmatpush3.bf16.msra.mxu1 %v3725_v2 }
 0x20e   : > { %3495 = vmatprep.subr.bf16.mxu1 %v3793_v1 }
 0x211   : > { %3496 = vmatpush3.bf16.msra.mxu1 %v3727_v4 }
 0x212   : > { %3497 = vmatprep.subr.bf16.mxu1 %v3793_v1 }
 0x215   : > { %3498 = vmatpush3.bf16.msra.mxu1 %v3729_v6  ;;  %v3746_v6 = vld [vmem:[%s4469_s15 + $0x8] sm:$0xff]  }
 0x216   : > { %3515 = vmatprep.subr.bf16.mxu1 %v3793_v1 }
 0x2ab   : > { %v1263_v7 = vpop.f32.mrb[8].mxu0 }
 0x2ac   : > { %v3429_v8 = vpop.f32.mrb[9].mxu0 }
 0x2ad   : > { %v1266_v9 = vpop.f32.mrb[10].mxu0  ;;  %v3104_v8 = vld [vmem:[%s4467_s13] ss:$0 sm:$0xff] }
 0x2ae   : > { %v3430_v10 = vpop.f32.mrb[11].mxu0 }
 0x2bb   : > { %v1190_v11 = vpop.f32.mrb[8].mxu1  ;;  %v1327_v13 = vpop.f32.mrb[12].mxu0 }
 0x2bc   : > { %v1478_v14 = vrot.slane %v1190_v11, 7  ;;  %v1328_v15 = vadd.f32 %v1327_v13, %v1263_v7  ;;  %v3417_v16 = vpop.f32.mrb[9].mxu1  ;;  %v3441_v17 = vpop.f32.mrb[13].mxu0  ;;  %v3748_v7 = vld [vmem:[%s4469_s15 + $0x10] sm:$0xff]  }
 0x2bd   : > { %v1193_v18 = vpop.f32.mrb[10].mxu1  ;;  %v1330_v19 = vpop.f32.mrb[14].mxu0 }
 0x2be   : > { %v1481_v20 = vsel %vm1480_vm4, 0.0, %v1478_v14  ;;  %v1476_v21 = vadd.f32 %v3071_v12, %v1328_v15  ;;  %v3418_v22 = vpop.f32.mrb[11].mxu1  ;;  %v3442_v23 = vpop.f32.mrb[15].mxu0 }
 0x2bf   : > { %v3742_v22 = vld [vmem:[%s4466_s12 + $0x8] sm:$0xff]  }
 0x2c0   : > { %v1482_v24 = vadd.f32 %v1481_v20, %v1476_v21 }
 0x2db   : > { %v1464_v25 = vpop.f32.mrb[12].mxu1 }
 0x2dc   : > { %v1484_v26 = vrot.slane %v1464_v25, 1  ;;  %v3465_v27 = vpop.f32.mrb[13].mxu1  ;;  %v3745_v25 = vld [vmem:[%s4469_s15 + $0x20] sm:$0xff]  }
 0x2dd   : > { %v1467_v28 = vpop.f32.mrb[14].mxu1  ;;  %v3749_v27 = vld [vmem:[%s4469_s15 + $0x30] sm:$0xff]  }
 0x2de   : > { %v1487_v29 = vsel %vm1486_vm5, %v1484_v26, 0.0  ;;  %v3466_v30 = vpop.f32.mrb[15].mxu1  ;;  %v3747_v26 = vld [vmem:[%s4469_s15 + $0x28] sm:$0xff]   ;;  %v3750_v28 = vld [vmem:[%s4469_s15 + $0x18] sm:$0xff]  }
 0x2df   : > { %v1488_v31 = vadd.f32 %v1487_v29, %v1482_v24  ;;  %v3743_v24 = vld [vmem:[%s4466_s12] sm:$0xff]   ;;  %v3751_v29 = vld [vmem:[%s4469_s15 + $0x38] sm:$0xff]  }
 0x2e1   : > { %v1489_v32 = vmax.f32 %v1488_v31, 0.0 }
 0x2e3   : > { %v1490_v34 = vpack.c.bf16 %v1489_v32, %v1489_v32 }
 0x2e5   : > { %3476 = vmatmul.mubr.msk.bf16.vlgmr.msra.gmra.mrb[16].mxu0 %vm809_vm1, %v1490_v34  ;;  %3500 = vmatmul.mubr.msk.bf16.vlgmr.msra.gmra.mrb[16].mxu1 %vm809_vm1, %v1490_v34 }
 0x2e6   : > { %3480 = vmatpush3.bf16.msra.mxu0 %v3730_v33  ;;  %3487 = vmatprep.mubr.msk.bf16.mxu0 %vm3794_vm0, %v3793_v1  ;;  %v3752_v33 = vld [vmem:[%s4468_s14] sm:$0xff]  }
 0x2e7   : > { %3481 = vmatprep.subr.bf16.mxu0 %v3793_v1  ;;  %3523 = vmatprep.mubr.msk.bf16.mxu1 %vm3794_vm0, %v3793_v1 }
 0x2e8   : > { %3516 = vmatpush3.bf16.msra.mxu1 %v3735_v39  ;;  %v3756_v39 = vld [vmem:[%s4468_s14 + $0x10] sm:$0xff]  }
 0x2e9   : > { %3517 = vmatprep.subr.bf16.mxu1 %v3793_v1 }
 0x2ea   : > { %3482 = vmatpush3.bf16.msra.mxu0 %v3731_v35 }
 0x2eb   : > { %3483 = vmatprep.subr.bf16.mxu0 %v3793_v1 }
 0x2ec   : > { %3518 = vmatpush3.bf16.msra.mxu1 %v3737_v41  ;;  %v3758_v41 = vld [vmem:[%s4468_s14 + $0x18] sm:$0xff]  }
 0x2ed   : > { %3519 = vmatprep.subr.bf16.mxu1 %v3793_v1 }
 0x2ee   : > { %3484 = vmatpush3.bf16.msra.mxu0 %v3732_v36 }
 0x2ef   : > { %3485 = vmatprep.subr.bf16.mxu0 %v3793_v1 }
 0x2f0   : > { %3520 = vmatpush3.bf16.msra.mxu1 %v3739_v43  ;;  %v3760_v43 = vld [vmem:[%s4183_s3] sm:$0xff]   ;;  %s767_s3 = scalar_lea.vmem %s4477_s23, %s3234_s24 }
 0x2f1   : > { %3521 = vmatprep.subr.bf16.mxu1 %v3793_v1 }
 0x2f2   : > { %3486 = vmatpush3.bf16.msra.mxu0 %v3733_v37  ;;  %v3754_v37 = vld [vmem:[%s4468_s14 + $0x8] sm:$0xff]  }
 0x2f3   : > { %3503 = vmatprep.subr.bf16.mxu0 %v3793_v1 }
 0x2f4   : > { %3522 = vmatpush3.bf16.msra.mxu1 %v3741_v45  ;;  %v3762_v45 = vld [vmem:[%s4469_s15 + $0x48] sm:$0xff]  }
 0x2f5   : > { %3488 = vmatmul.mubr.msk.bf16.vlgmr.msra.gmra.mrb[20].mxu0 %vm809_vm1, %v1490_v34  ;;  %3539 = vmatprep.subr.bf16.mxu1 %v3793_v1  ;;  %v3753_v34 = vld [vmem:[%s4468_s14 + $0x20] sm:$0xff]  }
 0x2f6   : > { %3511 = vmatprep.mubr.msk.bf16.mxu0 %vm3794_vm0, %v3793_v1  ;;  %3504 = vmatpush3.bf16.msra.mxu0 %v3734_v38  ;;  %v3755_v38 = vld [vmem:[%s4468_s14 + $0x28] sm:$0xff]  }
 0x2f7   : > { %3505 = vmatprep.subr.bf16.mxu0 %v3793_v1 }
 0x2fa   : > { %3506 = vmatpush3.bf16.msra.mxu0 %v3736_v40  ;;  %v3757_v40 = vld [vmem:[%s4468_s14 + $0x30] sm:$0xff]  }
 0x2fb   : > { %3507 = vmatprep.subr.bf16.mxu0 %v3793_v1 }
 0x2fe   : > { %3508 = vmatpush3.bf16.msra.mxu0 %v3738_v42  ;;  %v3759_v42 = vld [vmem:[%s4468_s14 + $0x38] sm:$0xff]  }
 0x2ff   : > { %3509 = vmatprep.subr.bf16.mxu0 %v3793_v1 }
 0x302   : > { %3510 = vmatpush3.bf16.msra.mxu0 %v3740_v44  ;;  %v3761_v44 = vld [vmem:[%s4469_s15 + $0x40] sm:$0xff]  }
 0x303   : > { %3527 = vmatprep.subr.bf16.mxu0 %v3793_v1 }
 0x3b8   : > { %v1561_v47 = vpop.f32.mrb[16].mxu0  ;;  %v1713_v48 = vpop.f32.mrb[16].mxu1 }
 0x3b9   : > { %v1720_v49 = vrot.slane %v1561_v47, 7  ;;  %v1714_v50 = vadd.f32 %v3098_v46, %v1713_v48  ;;  %v3477_v51 = vpop.f32.mrb[17].mxu0  ;;  %v3501_v52 = vpop.f32.mrb[17].mxu1  ;;  %v3763_v46 = vld [vmem:[%s4469_s15 + $0x50] sm:$0xff]   ;;  %v3764_v47 = vld [vmem:[%s4469_s15 + $0x58] sm:$0xff]   ;;  %v3765_v48 = vld [vmem:[%s4468_s14 + $0x40] sm:$0xff]  }
 0x3ba   : > { %v1564_v53 = vpop.f32.mrb[18].mxu0  ;;  %v1716_v54 = vpop.f32.mrb[18].mxu1  ;;  %v3768_v51 = vld [vmem:[%s4468_s14 + $0x58] sm:$0xff]   ;;  %v3769_v52 = vld [vmem:[%s4471_s17] sm:$0xff]  }
 0x3bb   : > { %v1722_v55 = vsel %vm1480_vm4, 0.0, %v1720_v49  ;;  %v3478_v56 = vpop.f32.mrb[19].mxu0  ;;  %v3502_v57 = vpop.f32.mrb[19].mxu1  ;;  %v3766_v49 = vld [vmem:[%s4468_s14 + $0x48] sm:$0xff]   ;;  %v3770_v53 = vld [vmem:[%s4471_s17 + $0x20] sm:$0xff]  }
 0x3bc   : > { %v1723_v58 = vadd.f32 %v1722_v55, %v1714_v50  ;;  %v3767_v50 = vld [vmem:[%s4468_s14 + $0x50] sm:$0xff]   ;;  %v3771_v54 = vld [vmem:[%s4471_s17 + $0x8] sm:$0xff]  }
 0x3bd   : > { %v3772_v55 = vld [vmem:[%s4471_s17 + $0x28] sm:$0xff]   ;;  %v3773_v56 = vld [vmem:[%s4471_s17 + $0x10] sm:$0xff]  }
 0x3be   : > { %v3774_v57 = vld [vmem:[%s4471_s17 + $0x30] sm:$0xff]  }
 0x3c8   : > { %v1643_v59 = vpop.f32.mrb[20].mxu0 }
 0x3c9   : > { %v1725_v60 = vrot.slane %v1643_v59, 1  ;;  %v3489_v61 = vpop.f32.mrb[21].mxu0  ;;  %v3776_v59 = vld [vmem:[%s4471_s17 + $0x38] sm:$0xff]  }
 0x3ca   : > { %v1646_v62 = vpop.f32.mrb[22].mxu0 }
 0x3cb   : > { %v1727_v63 = vsel %vm1486_vm5, %v1725_v60, 0.0  ;;  %v3490_v0 = vpop.f32.mrb[23].mxu0 }
 0x3cc   : > { %v1728_v2 = vadd.f32 %v1727_v63, %v1723_v58  ;;  %v3775_v58 = vld [vmem:[%s4471_s17 + $0x18] sm:$0xff]  }
 0x3ce   : > { %v1729_v3 = vmax.f32 %v1728_v2, 0.0  ;;  %v3192_v2 = vld [vmem:[%s4470_s16] ss:$0 sm:$0xff] }
 0x3d0   : > { %1730 = vst.msk [vmem:[%s757_s5] sm:$0xff] %vm809_vm1, %v1729_v3  ;;  %v1731_v4 = vpack.c.bf16 %v1729_v3, %v1729_v3 }
 0x3d2   : > { %3512 = vmatmul.mubr.msk.bf16.vlgmr.msra.gmra.mrb[24].mxu0 %vm809_vm1, %v1731_v4  ;;  %3524 = vmatmul.mubr.msk.bf16.vlgmr.msra.gmra.mrb[20].mxu1 %vm809_vm1, %v1731_v4 }
 0x3d3   : > { %3529 = vmatprep.mubr.msk.bf16.mxu0 %vm3794_vm0, %v3793_v1  ;;  %3547 = vmatprep.mubr.msk.bf16.mxu1 %vm3794_vm0, %v3793_v1 }
 0x3d4   : > { %3540 = vmatpush3.bf16.msra.mxu1 %v3744_v5 }
 0x3d5   : > { %3541 = vmatprep.subr.bf16.mxu1 %v3793_v1 }
 0x3d8   : > { %3542 = vmatpush3.bf16.msra.mxu1 %v3746_v6 }
 0x3d9   : > { %3543 = vmatprep.subr.bf16.mxu1 %v3793_v1 }
 0x3dc   : > { %3544 = vmatpush3.bf16.msra.mxu1 %v3748_v7 }
 0x3dd   : > { %3545 = vmatprep.subr.bf16.mxu1 %v3793_v1 }
 0x3e0   : > { %3546 = vmatpush3.bf16.msra.mxu1 %v3750_v28 }
 0x3e1   : > { %3551 = vmatprep.subr.bf16.mxu1 %v3793_v1 }
 0x4a5   : > { %v1808_v9 = vpop.f32.mrb[24].mxu0  ;;  %v1881_v10 = vpop.f32.mrb[20].mxu1 }
 0x4a6   : > { %v1809_v11 = vadd.f32 %v3104_v8, %v1808_v9  ;;  %v1882_v12 = vadd.f32 %v3104_v8, %v1881_v10  ;;  %v3513_v13 = vpop.f32.mrb[25].mxu0  ;;  %v3525_v14 = vpop.f32.mrb[21].mxu1 }
 0x4a7   : > { %v1811_v15 = vpop.f32.mrb[26].mxu0  ;;  %v1884_v16 = vpop.f32.mrb[22].mxu1 }
 0x4a8   : > { %v1893_v17 = vpack.c.bf16 %v1882_v12, %v1882_v12  ;;  %v3514_v18 = vpop.f32.mrb[27].mxu0  ;;  %v3526_v19 = vpop.f32.mrb[23].mxu1  ;;  %v1889_v20 = vpack.c.bf16 %v1809_v11, %v1809_v11 }
 0x4aa   : > { %v1905_v21 = vsel %vm1903_vm6, %v1893_v17, 0  ;;  %v1957_v23 = vsel %vm1903_vm6, %v1889_v20, 0 }
 0x4ab   : > { %3528 = vmatpush3.bf16.msra.mxu0 %v1905_v21 }
 0x4ac   : > { %3533 = vmatprep.subr.bf16.mxu0 %v3793_v1 }
 0x4ae   : > { %3530 = vmatmul.mubr.msk.bf16.vlgmr.msra.gmra.mrb[28].mxu0 %vm1899_vm7, %v3742_v22 }
 0x4af   : > { %3534 = vmatpush3.bf16.msra.mxu0 %v1957_v23  ;;  %3535 = vmatprep.mubr.msk.bf16.mxu0 %vm3794_vm0, %v3793_v1 }
 0x4b0   : > { %3563 = vmatprep.subr.bf16.mxu0 %v3793_v1 }
 0x4ba   : > { %3536 = vmatmul.mubr.msk.bf16.vlgmr.msra.gmra.mrb[28].mxu0 %vm1899_vm7, %v3743_v24 }
 0x4bb   : > { %3564 = vmatpush3.bf16.msra.mxu0 %v3745_v25  ;;  %3571 = vmatprep.mubr.msk.bf16.mxu0 %vm3794_vm0, %v3793_v1 }
 0x4bc   : > { %3565 = vmatprep.subr.bf16.mxu0 %v3793_v1 }
 0x4bf   : > { %3566 = vmatpush3.bf16.msra.mxu0 %v3747_v26 }
 0x4c0   : > { %3567 = vmatprep.subr.bf16.mxu0 %v3793_v1 }
 0x4c3   : > { %3568 = vmatpush3.bf16.msra.mxu0 %v3749_v27 }
 0x4c4   : > { %3569 = vmatprep.subr.bf16.mxu0 %v3793_v1 }
 0x4c7   : > { %3570 = vmatpush3.bf16.msra.mxu0 %v3751_v29 }
 0x4c8   : > { %3575 = vmatprep.subr.bf16.mxu0 %v3793_v1 }
 0x58d   : > { %v1993_v30 = vpop.f32.mrb[28].mxu0 }
 0x58e   : > { %v3537_v31 = vpop.f32.mrb[29].mxu0 }
 0x58f   : > { %v1996_v32 = vpop.f32.mrb[30].mxu0 }
 0x590   : > { %v2000_v35 = vpack.c.bf16 %v1996_v32, %v1993_v30  ;;  %v3538_v36 = vpop.f32.mrb[31].mxu0  ;;  %v3777_v32 = vld [vmem:[%s4471_s17 + $0x40] sm:$0xff]  }
 0x591   : > { %v3780_v36 = vld [vmem:[%s4471_s17 + $0x58] sm:$0xff]  }
 0x592   : > { %3548 = vmatmul.mubr.msk.bf16.vlgmr.msra.gmra.mrb[24].mxu1 %vm809_vm1, %v2000_v35  ;;  %3572 = vmatmul.mubr.msk.bf16.vlgmr.msra.gmra.mrb[32].mxu0 %vm809_vm1, %v2000_v35 }
 0x593   : > { %3552 = vmatpush3.bf16.msra.mxu1 %v3752_v33  ;;  %3576 = vmatpush3.bf16.msra.mxu0 %v3753_v34  ;;  %v3778_v34 = vld [vmem:[%s4471_s17 + $0x48] sm:$0xff]  }
 0x594   : > { %3553 = vmatprep.subr.bf16.mxu1 %v3793_v1  ;;  %3577 = vmatprep.subr.bf16.mxu0 %v3793_v1 }
 0x595   : > { %3559 = vmatprep.mubr.msk.bf16.mxu1 %vm3794_vm0, %v3793_v1  ;;  %3583 = vmatprep.mubr.msk.bf16.mxu0 %vm3794_vm0, %v3793_v1 }
 0x597   : > { %3554 = vmatpush3.bf16.msra.mxu1 %v3754_v37  ;;  %3578 = vmatpush3.bf16.msra.mxu0 %v3755_v38  ;;  %v3781_v37 = vld [vmem:[%s4473_s19] sm:$0xff]   ;;  %v3782_v38 = vld [vmem:[%s4473_s19 + $0x8] sm:$0xff]  }
 0x598   : > { %3555 = vmatprep.subr.bf16.mxu1 %v3793_v1  ;;  %3579 = vmatprep.subr.bf16.mxu0 %v3793_v1 }
 0x59b   : > { %3556 = vmatpush3.bf16.msra.mxu1 %v3756_v39  ;;  %3580 = vmatpush3.bf16.msra.mxu0 %v3757_v40  ;;  %v3783_v39 = vld [vmem:[%s4473_s19 + $0x10] sm:$0xff]   ;;  %v3784_v40 = vld [vmem:[%s4473_s19 + $0x18] sm:$0xff]  }
 0x59c   : > { %3557 = vmatprep.subr.bf16.mxu1 %v3793_v1  ;;  %3581 = vmatprep.subr.bf16.mxu0 %v3793_v1 }
 0x59f   : > { %3558 = vmatpush3.bf16.msra.mxu1 %v3758_v41  ;;  %3582 = vmatpush3.bf16.msra.mxu0 %v3759_v42  ;;  %v3219_v41 = vld [vmem:[%s4472_s18] ss:$0 sm:$0xff] }
 0x5a0   : > { %3587 = vmatprep.subr.bf16.mxu1 %v3793_v1  ;;  %3611 = vmatprep.subr.bf16.mxu0 %v3793_v1 }
 0x5a2   : > { %3560 = vmatmul.mubr.msk.bf16.vlgmr.msra.gmra.mrb[24].mxu1 %vm809_vm1, %v3760_v43  ;;  %3584 = vmatmul.mubr.msk.bf16.vlgmr.msra.gmra.mrb[36].mxu0 %vm809_vm1, %v3760_v43 }
 0x5a3   : > { %3588 = vmatpush3.bf16.msra.mxu1 %v3761_v44  ;;  %3595 = vmatprep.mubr.msk.bf16.mxu1 %vm3794_vm0, %v3793_v1 }
 0x5a4   : > { %3589 = vmatprep.subr.bf16.mxu1 %v3793_v1  ;;  %3619 = vmatprep.mubr.msk.bf16.mxu0 %vm3794_vm0, %v3793_v1 }
 0x5a5   : > { %3612 = vmatpush3.bf16.msra.mxu0 %v3769_v52 }
 0x5a6   : > { %3613 = vmatprep.subr.bf16.mxu0 %v3793_v1 }
 0x5a7   : > { %3590 = vmatpush3.bf16.msra.mxu1 %v3762_v45 }
 0x5a8   : > { %3591 = vmatprep.subr.bf16.mxu1 %v3793_v1 }
 0x5a9   : > { %3614 = vmatpush3.bf16.msra.mxu0 %v3771_v54 }
 0x5aa   : > { %3615 = vmatprep.subr.bf16.mxu0 %v3793_v1 }
 0x5ab   : > { %3592 = vmatpush3.bf16.msra.mxu1 %v3763_v46 }
 0x5ac   : > { %3593 = vmatprep.subr.bf16.mxu1 %v3793_v1 }
 0x5ad   : > { %3616 = vmatpush3.bf16.msra.mxu0 %v3773_v56 }
 0x5ae   : > { %3617 = vmatprep.subr.bf16.mxu0 %v3793_v1 }
 0x5af   : > { %3594 = vmatpush3.bf16.msra.mxu1 %v3764_v47 }
 0x5b0   : > { %3599 = vmatprep.subr.bf16.mxu1 %v3793_v1 }
 0x5b1   : > { %3618 = vmatpush3.bf16.msra.mxu0 %v3775_v58 }
 0x5b2   : > { %3596 = vmatmul.mubr.msk.bf16.vlgmr.msra.gmra.mrb[28].mxu1 %vm809_vm1, %v2000_v35  ;;  %3623 = vmatprep.subr.bf16.mxu0 %v3793_v1  ;;  %v3779_v35 = vld [vmem:[%s4471_s17 + $0x50] sm:$0xff]  }
 0x5b3   : > { %3600 = vmatpush3.bf16.msra.mxu1 %v3765_v48  ;;  %3607 = vmatprep.mubr.msk.bf16.mxu1 %vm3794_vm0, %v3793_v1 }
 0x5b4   : > { %3601 = vmatprep.subr.bf16.mxu1 %v3793_v1 }
 0x5b7   : > { %3602 = vmatpush3.bf16.msra.mxu1 %v3766_v49 }
 0x5b8   : > { %3603 = vmatprep.subr.bf16.mxu1 %v3793_v1 }
 0x5bb   : > { %3604 = vmatpush3.bf16.msra.mxu1 %v3767_v50 }
 0x5bc   : > { %3605 = vmatprep.subr.bf16.mxu1 %v3793_v1 }
 0x5bf   : > { %3606 = vmatpush3.bf16.msra.mxu1 %v3768_v51 }
 0x5c0   : > { %3635 = vmatprep.subr.bf16.mxu1 %v3793_v1 }
 0x5c2   : > { %3608 = vmatmul.mubr.msk.bf16.vlgmr.msra.gmra.mrb[28].mxu1 %vm809_vm1, %v3760_v43 }
 0x5c3   : > { %3643 = vmatprep.mubr.msk.bf16.mxu1 %vm3794_vm0, %v3793_v1  ;;  %3636 = vmatpush3.bf16.msra.mxu1 %v3770_v53 }
 0x5c4   : > { %3637 = vmatprep.subr.bf16.mxu1 %v3793_v1 }
 0x5c7   : > { %3638 = vmatpush3.bf16.msra.mxu1 %v3772_v55 }
 0x5c8   : > { %3639 = vmatprep.subr.bf16.mxu1 %v3793_v1 }
 0x5cb   : > { %3640 = vmatpush3.bf16.msra.mxu1 %v3774_v57 }
 0x5cc   : > { %3641 = vmatprep.subr.bf16.mxu1 %v3793_v1 }
 0x5cf   : > { %3642 = vmatpush3.bf16.msra.mxu1 %v3776_v59 }
 0x665   : > { %v2246_v60 = vpop.f32.mrb[32].mxu0 }
 0x666   : > { %v3573_v61 = vpop.f32.mrb[33].mxu0 }
 0x667   : > { %v2249_v62 = vpop.f32.mrb[34].mxu0 }
 0x668   : > { %v3574_v63 = vpop.f32.mrb[35].mxu0 }
 0x675   : > { %v2172_v0 = vpop.f32.mrb[24].mxu1  ;;  %v2311_v3 = vpop.f32.mrb[36].mxu0 }
 0x676   : > { %v2467_v4 = vrot.slane %v2172_v0, 7  ;;  %v2312_v5 = vadd.f32 %v2311_v3, %v2246_v60  ;;  %v3561_v6 = vpop.f32.mrb[25].mxu1  ;;  %v3585_v7 = vpop.f32.mrb[37].mxu0 }
 0x677   : > { %v2175_v8 = vpop.f32.mrb[26].mxu1  ;;  %v2314_v9 = vpop.f32.mrb[38].mxu0  ;;  %v3225_v7 = vld [vmem:[%s4474_s20] ss:$0 sm:$0xff] }
 0x678   : > { %v2472_v10 = vsel %vm1480_vm4, 0.0, %v2467_v4  ;;  %v2463_v11 = vadd.f32 %v3192_v2, %v2312_v5  ;;  %v2468_v12 = vrot.slane %v2175_v8, 7  ;;  %v2315_v13 = vadd.f32 %v2314_v9, %v2249_v62  ;;  %v3562_v14 = vpop.f32.mrb[27].mxu1  ;;  %v3586_v15 = vpop.f32.mrb[39].mxu0 }
 0x67a   : > { %v2473_v16 = vadd.f32 %v2472_v10, %v2463_v11  ;;  %v2469_v17 = vsel %vm1480_vm4, %v2467_v4, %v2468_v12  ;;  %v2464_v18 = vadd.f32 %v3192_v2, %v2315_v13 }
 0x67c   : > { %v2474_v19 = vadd.f32 %v2469_v17, %v2464_v18 }
 0x695   : > { %v2450_v20 = vpop.f32.mrb[28].mxu1 }
 0x696   : > { %v3609_v21 = vpop.f32.mrb[29].mxu1  ;;  %v2477_v23 = vrot.slane %v2450_v20, 1 }
 0x697   : > { %v2453_v22 = vpop.f32.mrb[30].mxu1 }
 0x698   : > { %v2478_v24 = vrot.slane %v2453_v22, 1  ;;  %v3610_v25 = vpop.f32.mrb[31].mxu1 }
 0x69a   : > { %v2479_v26 = vsel %vm1486_vm5, %v2477_v23, %v2478_v24  ;;  %v2482_v27 = vsel %vm1486_vm5, %v2478_v24, 0.0 }
 0x69b   : > { %v2483_v28 = vadd.f32 %v2479_v26, %v2473_v16  ;;  %v2484_v29 = vadd.f32 %v2482_v27, %v2474_v19 }
 0x69d   : > { %v2485_v30 = vmax.f32 %v2483_v28, 0.0  ;;  %v2486_v31 = vmax.f32 %v2484_v29, 0.0 }
 0x69f   : > { %v2487_v33 = vpack.c.bf16 %v2486_v31, %v2485_v30 }
 0x6a1   : > { %3620 = vmatmul.mubr.msk.bf16.vlgmr.msra.gmra.mrb[40].mxu0 %vm809_vm1, %v2487_v33  ;;  %3644 = vmatmul.mubr.msk.bf16.vlgmr.msra.gmra.mrb[32].mxu1 %vm809_vm1, %v2487_v33 }
 0x6a2   : > { %3624 = vmatpush3.bf16.msra.mxu0 %v3777_v32  ;;  %3631 = vmatprep.mubr.msk.bf16.mxu0 %vm3794_vm0, %v3793_v1 }
 0x6a3   : > { %3625 = vmatprep.subr.bf16.mxu0 %v3793_v1 }
 0x6a6   : > { %3626 = vmatpush3.bf16.msra.mxu0 %v3778_v34 }
 0x6a7   : > { %3627 = vmatprep.subr.bf16.mxu0 %v3793_v1 }
 0x6aa   : > { %3628 = vmatpush3.bf16.msra.mxu0 %v3779_v35 }
 0x6ab   : > { %3629 = vmatprep.subr.bf16.mxu0 %v3793_v1 }
 0x6ae   : > { %3630 = vmatpush3.bf16.msra.mxu0 %v3780_v36 }
 0x6af   : > { %3647 = vmatprep.subr.bf16.mxu0 %v3793_v1 }
 0x6b1   : > { %3632 = vmatmul.mubr.msk.bf16.vlgmr.msra.gmra.mrb[44].mxu0 %vm809_vm1, %v2487_v33 }
 0x6b2   : > { %3655 = vmatprep.mubr.msk.bf16.mxu0 %vm3794_vm0, %v3793_v1  ;;  %3648 = vmatpush3.bf16.msra.mxu0 %v3781_v37 }
 0x6b3   : > { %3649 = vmatprep.subr.bf16.mxu0 %v3793_v1 }
 0x6b6   : > { %3650 = vmatpush3.bf16.msra.mxu0 %v3782_v38 }
 0x6b7   : > { %3651 = vmatprep.subr.bf16.mxu0 %v3793_v1 }
 0x6ba   : > { %3652 = vmatpush3.bf16.msra.mxu0 %v3783_v39 }
 0x6bb   : > { %3653 = vmatprep.subr.bf16.mxu0 %v3793_v1 }
 0x6be   : > { %3654 = vmatpush3.bf16.msra.mxu0 %v3784_v40 }
 0x774   : > { %v2558_v42 = vpop.f32.mrb[40].mxu0  ;;  %v2712_v43 = vpop.f32.mrb[32].mxu1 }
 0x775   : > { %v2721_v44 = vrot.slane %v2558_v42, 7  ;;  %v2713_v45 = vadd.f32 %v3219_v41, %v2712_v43  ;;  %v3621_v46 = vpop.f32.mrb[41].mxu0  ;;  %v3645_v47 = vpop.f32.mrb[33].mxu1 }
 0x776   : > { %v2561_v48 = vpop.f32.mrb[42].mxu0  ;;  %v2715_v49 = vpop.f32.mrb[34].mxu1 }
 0x777   : > { %v2726_v1 = vsel %vm1480_vm4, 0.0, %v2721_v44  ;;  %v2722_v50 = vrot.slane %v2561_v48, 7  ;;  %v2716_v51 = vadd.f32 %v3219_v41, %v2715_v49  ;;  %v3622_v52 = vpop.f32.mrb[43].mxu0  ;;  %v3646_v53 = vpop.f32.mrb[35].mxu1 }
 0x778   : > { %v2727_v54 = vadd.f32 %v2726_v1, %v2713_v45 }
 0x779   : > { %v2723_v55 = vsel %vm1480_vm4, %v2721_v44, %v2722_v50 }
 0x77a   : > { %v2728_v56 = vadd.f32 %v2723_v55, %v2716_v51 }
 0x784   : > { %v2641_v57 = vpop.f32.mrb[44].mxu0 }
 0x785   : > { %v3633_v58 = vpop.f32.mrb[45].mxu0  ;;  %v2731_v60 = vrot.slane %v2641_v57, 1 }
 0x786   : > { %v2644_v59 = vpop.f32.mrb[46].mxu0 }
 0x787   : > { %v2732_v61 = vrot.slane %v2644_v59, 1  ;;  %v3634_v62 = vpop.f32.mrb[47].mxu0 }
 0x789   : > { %v2733_v63 = vsel %vm1486_vm5, %v2731_v60, %v2732_v61  ;;  %v2736_v0 = vsel %vm1486_vm5, %v2732_v61, 0.0 }
 0x78a   : > { %v2737_v2 = vadd.f32 %v2733_v63, %v2727_v54  ;;  %v2738_v3 = vadd.f32 %v2736_v0, %v2728_v56 }
 0x78c   : > { %v2739_v4 = vmax.f32 %v2737_v2, 0.0  ;;  %v2740_v5 = vmax.f32 %v2738_v3, 0.0 }
 0x78e   : > { %v2743_v6 = vpack.c.bf16 %v2740_v5, %v2739_v4  ;;  %2741 = vst.msk [vmem:[%s762_s7] sm:$0xff] %vm809_vm1, %v2739_v4  ;;  %2742 = vst.msk [vmem:[%s762_s7 + $0x8] sm:$0xff] %vm809_vm1, %v2740_v5 }
 0x790   : > { %3656 = vmatmul.mubr.msk.bf16.vlgmr.msra.gmra.mrb[48].mxu0 %vm809_vm1, %v2743_v6 }
 0x863   : > { %v2820_v8 = vpop.f32.mrb[48].mxu0 }
 0x864   : > { %v2821_v9 = vadd.f32 %v3225_v7, %v2820_v8  ;;  %v3657_v10 = vpop.f32.mrb[49].mxu0 }
 0x865   : > { %v2823_v11 = vpop.f32.mrb[50].mxu0 }
 0x866   : > { %2828 = vst.msk [vmem:[%s767_s3] sm:$0xff] %vm2827_vm8, %v2821_v9  ;;  %v2824_v12 = vadd.f32 %v3225_v7, %v2823_v11  ;;  %v3658_v13 = vpop.f32.mrb[51].mxu0 }
 0x868   : > { %2829 = vst.msk [vmem:[%s767_s3 + $0x8] sm:$0xff] %vm2827_vm8, %v2824_v12 }
 0x869 PF: > { %s34_s4 = sadd.s32 1, %s3791_s4  }
 0x86a   : > { %p31_p4 = scmp.ge.s32.totalorder %s34_s4, 4  }
 0x86c   :  { %33 = sbr.rel (!%p31_p4) target bundleno = 9 (0x9), region = 180 }

</bundles_post_ra>
